<compile_context>
chip_gen: v7x
topology: tpu7x:2x2x1
jax: 0.10.0
libtpu: 0.0.40
codegen_flags: <defaults>
</compile_context>

<pallas_src>
import jax
import jax.numpy as jnp
from jax.experimental import pallas as pl
from jax.experimental.pallas import tpu as pltpu

# ---------------- model dimensions (small, consistent with the module) ----------------
B = 2          # batch
S = 8          # sequence length
HIN = 32       # stand-in for bert.config.hidden_size
H = 128        # LSTM hidden size (as in the module)
VOCAB = 100
NUM_CLASSES = 2

BP = 8         # sublane-padded rows per timestep block: rows 0:B fwd, B:2B bwd, rest pad
NCP = 128      # lane-padded FC output columns per direction half
H3 = 3 * H
H4 = 4 * H

assert 2 * B <= BP, "fwd+bwd batch rows must fit in one 8-sublane tile"


def bilstm_fc_kernel(x_ref,      # (S*BP, 2*HIN) bf16: block t rows 0:B = [x_t | 0], rows B:2B = [0 | x_{S-1-t}]
                     wih_ref,    # (2*HIN, 4H) bf16: rows 0:HIN fwd proj, HIN:2HIN bwd proj; gate cols [i,f,o,g]
                     b_ref,      # (S*BP, 4H) f32: per-row fused (bih+bhh) biases, tiled over timesteps
                     whh_ref,    # (2H, 4H) bf16 "diagonal": rows 0:H fwd recurrent, rows H:2H bwd recurrent
                     mask_ref,   # (BP, 2H) f32: fwd rows keep lanes 0:H, bwd rows keep lanes H:2H
                     wfc_ref,    # (H, 2*NCP) bf16: cols 0:NC fwd FC half, cols NCP:NCP+NC bwd FC half
                     bfc_ref,    # (1, 2*NCP) f32 (FC bias placed in fwd cols 0:NC only)
                     out_ref):   # (S*BP, 2*NCP) f32 lane-dense output slab
    # Hoisted input projection + fused biases for both directions / all gates (one MXU call).
    gates_x = (jnp.dot(x_ref[...], wih_ref[...],
                       preferred_element_type=jnp.float32)
               + b_ref[...])                                      # (S*BP, 4H) f32

    whh = whh_ref[...]                                            # (2H, 4H) bf16
    dmask = mask_ref[...]                                         # (BP, 2H) f32

    # Recurrent state carried in values: one stacked tile covers both directions.
    h_in = jnp.zeros((BP, 2 * H), jnp.bfloat16)                   # [h_f | 0] on fwd rows, [0 | h_b] on bwd rows
    c = jnp.zeros((BP, H), jnp.float32)                           # stacked cell state
    hs = []                                                       # per-step (BP, H) hidden tiles

    # Fully unrolled recurrence: iteration t handles fwd timestep t (rows 0:B)
    # and bwd timestep S-1-t (rows B:2B) in the same 8-sublane tile.
    for t in range(S):
        rs = t * BP
        # one fused MXU op per step: (BP, 2H) bf16 x (2H, 4H) bf16 -> (BP, 4H) f32
        gh = jnp.dot(h_in, whh, preferred_element_type=jnp.float32)
        g = gates_x[rs:rs + BP, :] + gh                           # (BP, 4H), whole-tile slice

        # gate order [i, f, o, g]: one sigmoid over 3 lane-tiles + one tanh
        sg = jax.nn.sigmoid(g[:, 0:H3])                           # i | f | o
        gt = jnp.tanh(g[:, H3:H4])                                # g
        c = sg[:, H:2 * H] * c + sg[:, 0:H] * gt                  # f*c + i*g
        h_new = sg[:, 2 * H:H3] * jnp.tanh(c)                     # o*tanh(c), (BP, H) f32

        hs.append(h_new)
        # rebuild the direction-selected recurrent input (pure VPU: concat + mask mul)
        h_in = (jnp.concatenate([h_new, h_new], axis=1) * dmask).astype(jnp.bfloat16)

    # FC epilogue: one bf16 matmul over all timesteps, one lane-dense store.
    h_all = jnp.concatenate(hs, axis=0).astype(jnp.bfloat16)      # (S*BP, H)
    out_ref[...] = (jnp.dot(h_all, wfc_ref[...],
                            preferred_element_type=jnp.float32)
                    + bfc_ref[...])


def bilstm_fc_pallas(x_stacked, params):
    """x_stacked: (S*BP, 2*HIN) bf16 direction-stacked input -> (S*BP, 2*NCP) f32 slab."""
    vmem = pl.BlockSpec(memory_space=pltpu.MemorySpace.VMEM)
    return pl.pallas_call(
        bilstm_fc_kernel,
        out_shape=jax.ShapeDtypeStruct((S * BP, 2 * NCP), jnp.float32),
        in_specs=[vmem] * 7,
        out_specs=vmem,
    )(x_stacked,
      params["wih_stacked"], params["b_tiled"], params["whh_diag"],
      params["dir_mask"], params["wfc_both"], params["bfc_pad"])


def _ifgo_to_ifog(w):
    """Reorder PyTorch LSTM gate rows [i, f, g, o] -> [i, f, o, g] (trace/init-time, free)."""
    return jnp.concatenate([w[0:H], w[H:2 * H], w[3 * H:4 * H], w[2 * H:3 * H]], axis=0)


def init_params(key):
    """Deterministic parameters matching the PyTorch module's shapes."""
    ks = jax.random.split(key, 12)
    bound_l = 1.0 / jnp.sqrt(H)
    u = lambda k, shape, b: jax.random.uniform(k, shape, jnp.float32, -b, b)

    # nn.LSTM(HIN, 128, bidirectional=True): per direction
    #   weight_ih (4H, HIN), weight_hh (4H, H), bias_ih (4H,), bias_hh (4H,)
    wih_f = u(ks[0], (4 * H, HIN), bound_l)
    whh_f = u(ks[1], (4 * H, H), bound_l)
    bih_f = u(ks[2], (4 * H,), bound_l)
    bhh_f = u(ks[3], (4 * H,), bound_l)
    wih_b = u(ks[4], (4 * H, HIN), bound_l)
    whh_b = u(ks[5], (4 * H, H), bound_l)
    bih_b = u(ks[6], (4 * H,), bound_l)
    bhh_b = u(ks[7], (4 * H,), bound_l)

    # nn.Linear(256, 2): weight (2, 256), bias (2,)
    bound_fc = 1.0 / jnp.sqrt(2 * H)
    wfc = u(ks[8], (NUM_CLASSES, 2 * H), bound_fc)
    bfc = u(ks[9], (NUM_CLASSES,), bound_fc)

    # stand-in embedding for the BERT encoder output
    emb = 0.1 * jax.random.normal(ks[10], (VOCAB, HIN), jnp.float32)

    # ---- kernel-layout (fused / reordered / padded) params ----
    # fused, direction-stacked input projection: rows 0:HIN -> fwd, HIN:2HIN -> bwd
    wih_stacked = jnp.concatenate([_ifgo_to_ifog(wih_f).T,
                                   _ifgo_to_ifog(wih_b).T], axis=0).astype(jnp.bfloat16)

    # "diagonal" recurrent weight (2H, 4H): rows 0:H read h_f (fwd rows), rows H:2H read h_b (bwd rows)
    whh_diag = jnp.concatenate([_ifgo_to_ifog(whh_f).T,
                                _ifgo_to_ifog(whh_b).T], axis=0).astype(jnp.bfloat16)

    # per-row fused biases, one 8-row block per timestep, tiled over S (hoisted add)
    b_block = jnp.zeros((BP, 4 * H), jnp.float32)
    b_block = b_block.at[0:B, :].set(_ifgo_to_ifog(bih_f + bhh_f)[None, :])
    b_block = b_block.at[B:2 * B, :].set(_ifgo_to_ifog(bih_b + bhh_b)[None, :])
    b_tiled = jnp.tile(b_block, (S, 1))                            # (S*BP, 4H)

    # direction mask for the recurrent state: fwd rows keep lanes 0:H, bwd rows keep lanes H:2H
    dir_mask = jnp.zeros((BP, 2 * H), jnp.float32)
    dir_mask = dir_mask.at[0:B, 0:H].set(1.0)
    dir_mask = dir_mask.at[B:2 * B, H:2 * H].set(1.0)

    # lane-dense FC weights: fwd half in cols 0:NC, bwd half in cols NCP:NCP+NC
    wfc_both = jnp.zeros((H, 2 * NCP), jnp.float32)
    wfc_both = wfc_both.at[:, 0:NUM_CLASSES].set(wfc[:, 0:H].T)
    wfc_both = wfc_both.at[:, NCP:NCP + NUM_CLASSES].set(wfc[:, H:2 * H].T)
    bfc_pad = jnp.zeros((1, 2 * NCP), jnp.float32).at[0, 0:NUM_CLASSES].set(bfc)

    return {
        # raw (PyTorch-shaped) params, used by the pure-JAX reference
        "wih_f": wih_f, "whh_f": whh_f, "bih_f": bih_f, "bhh_f": bhh_f,
        "wih_b": wih_b, "whh_b": whh_b, "bih_b": bih_b, "bhh_b": bhh_b,
        "wfc": wfc, "bfc_raw": bfc, "emb": emb,
        # kernel-layout params
        "wih_stacked": wih_stacked,
        "whh_diag": whh_diag,
        "b_tiled": b_tiled,
        "dir_mask": dir_mask,
        "wfc_both": wfc_both.astype(jnp.bfloat16),
        "bfc_pad": bfc_pad,
    }


def model_forward(input_ids, attention_mask, params):
    """Full forward: (B, S) ids + mask -> (B, S, 2) logits (batch_first, as in PyTorch)."""
    # BERT stand-in (glue, plain JAX): embedding lookup, masked.
    x = params["emb"][input_ids] * attention_mask[..., None].astype(jnp.float32)   # (B, S, HIN)
    xt = jnp.transpose(x, (1, 0, 2))                                               # (S, B, HIN) time-major

    # direction-stacked, sublane-padded kernel input:
    #   block t rows 0:B   = fwd timestep t   in feature cols 0:HIN
    #   block t rows B:2B  = bwd timestep S-1-t in feature cols HIN:2HIN
    x_st = jnp.zeros((S, BP, 2 * HIN), jnp.float32)
    x_st = x_st.at[:, 0:B, 0:HIN].set(xt)
    x_st = x_st.at[:, B:2 * B, HIN:2 * HIN].set(xt[::-1])
    x_st = x_st.reshape(S * BP, 2 * HIN).astype(jnp.bfloat16)

    out_slab = bilstm_fc_pallas(x_st, params)                                      # (S*BP, 2*NCP)

    # layout plumbing only: re-align fwd/bwd halves and slice the 2 valid classes
    o = out_slab.reshape(S, BP, 2, NCP)
    fwd = o[:, 0:B, 0, 0:NUM_CLASSES]                 # (S, B, 2) fwd FC half (+ bias) at timestep t
    bwd = o[::-1, B:2 * B, 1, 0:NUM_CLASSES]          # (S, B, 2) bwd FC half, re-reversed to timestep order
    return jnp.transpose(fwd + bwd, (1, 0, 2))        # (B, S, 2)


# ---------------- pure-JAX reference (for correctness check) ----------------
def _lstm_dir_ref(x_bsd, wih, whh, bih, bhh, reverse):
    xs = jnp.swapaxes(x_bsd, 0, 1)  # (S, B, HIN)
    if reverse:
        xs = xs[::-1]

    def cell(carry, xt):
        h, c = carry
        gates = xt @ wih.T + h @ whh.T + bih + bhh
        i, f, g, o = jnp.split(gates, 4, axis=-1)
        c = jax.nn.sigmoid(f) * c + jax.nn.sigmoid(i) * jnp.tanh(g)
        h = jax.nn.sigmoid(o) * jnp.tanh(c)
        return (h, c), h

    init = (jnp.zeros((x_bsd.shape[0], H), jnp.float32),
            jnp.zeros((x_bsd.shape[0], H), jnp.float32))
    _, hs = jax.lax.scan(cell, init, xs)
    if reverse:
        hs = hs[::-1]
    return jnp.swapaxes(hs, 0, 1)  # (B, S, H)


def model_forward_ref(input_ids, attention_mask, params):
    x = params["emb"][input_ids] * attention_mask[..., None].astype(jnp.float32)
    hf = _lstm_dir_ref(x, params["wih_f"], params["whh_f"],
                       params["bih_f"], params["bhh_f"], reverse=False)
    hb = _lstm_dir_ref(x, params["wih_b"], params["whh_b"],
                       params["bih_b"], params["bhh_b"], reverse=True)
    h = jnp.concatenate([hf, hb], axis=-1)          # (B, S, 2H)
    return h @ params["wfc"].T + params["bfc_raw"]  # (B, S, 2)


if __name__ == "__main__":
    key = jax.random.PRNGKey(0)
    k_par, k_ids, k_mask = jax.random.split(key, 3)

    params = init_params(k_par)
    input_ids = jax.random.randint(k_ids, (B, S), 0, VOCAB, dtype=jnp.int32)
    attention_mask = jnp.ones((B, S), dtype=jnp.int32)

    out = model_forward(input_ids, attention_mask, params)
    out = jax.block_until_ready(out)

    ref = model_forward_ref(input_ids, attention_mask, params)
    assert out.shape == (B, S, NUM_CLASSES), out.shape
    # tolerance relaxed: input projection, recurrence and FC all use bf16 MXU
    # operands (f32 accumulation); rounding compounds over the 8 serial steps.
    assert jnp.allclose(out, ref, rtol=3e-2, atol=3e-2), (
        float(jnp.max(jnp.abs(out - ref))))

    print("KERNEL_OK")
</pallas_src>

<mosaic_0001>
module attributes {stable_mosaic.version = 11 : i64} {
  func.func @bilstm_fc_kernel(%arg0: memref<64x64xbf16, #tpu.memory_space<vmem>>, %arg1: memref<64x512xbf16, #tpu.memory_space<vmem>>, %arg2: memref<64x512xf32, #tpu.memory_space<vmem>>, %arg3: memref<256x512xbf16, #tpu.memory_space<vmem>>, %arg4: memref<8x256xf32, #tpu.memory_space<vmem>>, %arg5: memref<128x256xbf16, #tpu.memory_space<vmem>>, %arg6: memref<1x256xf32, #tpu.memory_space<vmem>>, %arg7: memref<64x256xf32, #tpu.memory_space<vmem>>) attributes {dimension_semantics = [], scalar_prefetch = 0 : i64, scratch_operands = 0 : i64, tpu.core_type = #tpu.core_type<tc>} {
    %c0 = arith.constant 0 : index
    %c0_0 = arith.constant 0 : index
    %0 = vector.load %arg0[%c0, %c0_0] : memref<64x64xbf16, #tpu.memory_space<vmem>>, vector<64x64xbf16>
    %c0_1 = arith.constant 0 : index
    %c0_2 = arith.constant 0 : index
    %1 = vector.load %arg1[%c0_1, %c0_2] : memref<64x512xbf16, #tpu.memory_space<vmem>>, vector<64x512xbf16>
    %cst = arith.constant dense<0.000000e+00> : vector<64x512xf32>
    %2 = tpu.matmul %0, %1, %cst {dimension_numbers = #tpu.dot_dimension_numbers<[1], [0], [0], [1], [0, 0, 1, 1], [], []>} : vector<64x64xbf16>, vector<64x512xbf16>, vector<64x512xf32> -> vector<64x512xf32>
    %c0_3 = arith.constant 0 : index
    %c0_4 = arith.constant 0 : index
    %3 = vector.load %arg2[%c0_3, %c0_4] : memref<64x512xf32, #tpu.memory_space<vmem>>, vector<64x512xf32>
    %4 = arith.addf %2, %3 : vector<64x512xf32>
    %c0_5 = arith.constant 0 : index
    %c0_6 = arith.constant 0 : index
    %5 = vector.load %arg3[%c0_5, %c0_6] : memref<256x512xbf16, #tpu.memory_space<vmem>>, vector<256x512xbf16>
    %c0_7 = arith.constant 0 : index
    %c0_8 = arith.constant 0 : index
    %6 = vector.load %arg4[%c0_7, %c0_8] : memref<8x256xf32, #tpu.memory_space<vmem>>, vector<8x256xf32>
    %cst_9 = arith.constant 0.000000e+00 : bf16
    %7 = vector.broadcast %cst_9 : bf16 to vector<8x256xbf16>
    %cst_10 = arith.constant 0.000000e+00 : f32
    %8 = vector.broadcast %cst_10 : f32 to vector<8x128xf32>
    %cst_11 = arith.constant dense<0.000000e+00> : vector<8x512xf32>
    %9 = tpu.matmul %7, %5, %cst_11 {dimension_numbers = #tpu.dot_dimension_numbers<[1], [0], [0], [1], [0, 0, 1, 1], [], []>} : vector<8x256xbf16>, vector<256x512xbf16>, vector<8x512xf32> -> vector<8x512xf32>
    %10 = vector.extract_strided_slice %4 {offsets = [0, 0], sizes = [8, 512], strides = [1, 1]} : vector<64x512xf32> to vector<8x512xf32>
    %11 = arith.addf %10, %9 : vector<8x512xf32>
    %12 = vector.extract_strided_slice %11 {offsets = [0, 0], sizes = [8, 384], strides = [1, 1]} : vector<8x512xf32> to vector<8x384xf32>
    %13 = arith.negf %12 : vector<8x384xf32>
    %14 = math.exp %13 : vector<8x384xf32>
    %cst_12 = arith.constant 1.000000e+00 : f32
    %15 = vector.broadcast %cst_12 : f32 to vector<8x384xf32>
    %16 = arith.addf %15, %14 : vector<8x384xf32>
    %17 = arith.divf %15, %16 : vector<8x384xf32>
    %18 = vector.extract_strided_slice %11 {offsets = [0, 384], sizes = [8, 128], strides = [1, 1]} : vector<8x512xf32> to vector<8x128xf32>
    %19 = math.tanh %18 : vector<8x128xf32>
    %20 = vector.extract_strided_slice %17 {offsets = [0, 128], sizes = [8, 128], strides = [1, 1]} : vector<8x384xf32> to vector<8x128xf32>
    %21 = arith.mulf %20, %8 : vector<8x128xf32>
    %22 = vector.extract_strided_slice %17 {offsets = [0, 0], sizes = [8, 128], strides = [1, 1]} : vector<8x384xf32> to vector<8x128xf32>
    %23 = arith.mulf %22, %19 : vector<8x128xf32>
    %24 = arith.addf %21, %23 : vector<8x128xf32>
    %25 = vector.extract_strided_slice %17 {offsets = [0, 256], sizes = [8, 128], strides = [1, 1]} : vector<8x384xf32> to vector<8x128xf32>
    %26 = math.tanh %24 : vector<8x128xf32>
    %27 = arith.mulf %25, %26 : vector<8x128xf32>
    %28 = tpu.concatenate %27, %27 in 1 : vector<8x128xf32>, vector<8x128xf32> -> vector<8x256xf32>
    %29 = arith.mulf %28, %6 : vector<8x256xf32>
    %30 = arith.truncf %29 : vector<8x256xf32> to vector<8x256xbf16>
    %cst_13 = arith.constant dense<0.000000e+00> : vector<8x512xf32>
    %31 = tpu.matmul %30, %5, %cst_13 {dimension_numbers = #tpu.dot_dimension_numbers<[1], [0], [0], [1], [0, 0, 1, 1], [], []>} : vector<8x256xbf16>, vector<256x512xbf16>, vector<8x512xf32> -> vector<8x512xf32>
    %32 = vector.extract_strided_slice %4 {offsets = [8, 0], sizes = [8, 512], strides = [1, 1]} : vector<64x512xf32> to vector<8x512xf32>
    %33 = arith.addf %32, %31 : vector<8x512xf32>
    %34 = vector.extract_strided_slice %33 {offsets = [0, 0], sizes = [8, 384], strides = [1, 1]} : vector<8x512xf32> to vector<8x384xf32>
    %35 = arith.negf %34 : vector<8x384xf32>
    %36 = math.exp %35 : vector<8x384xf32>
    %cst_14 = arith.constant 1.000000e+00 : f32
    %37 = vector.broadcast %cst_14 : f32 to vector<8x384xf32>
    %38 = arith.addf %37, %36 : vector<8x384xf32>
    %39 = arith.divf %37, %38 : vector<8x384xf32>
    %40 = vector.extract_strided_slice %33 {offsets = [0, 384], sizes = [8, 128], strides = [1, 1]} : vector<8x512xf32> to vector<8x128xf32>
    %41 = math.tanh %40 : vector<8x128xf32>
    %42 = vector.extract_strided_slice %39 {offsets = [0, 128], sizes = [8, 128], strides = [1, 1]} : vector<8x384xf32> to vector<8x128xf32>
    %43 = arith.mulf %42, %24 : vector<8x128xf32>
    %44 = vector.extract_strided_slice %39 {offsets = [0, 0], sizes = [8, 128], strides = [1, 1]} : vector<8x384xf32> to vector<8x128xf32>
    %45 = arith.mulf %44, %41 : vector<8x128xf32>
    %46 = arith.addf %43, %45 : vector<8x128xf32>
    %47 = vector.extract_strided_slice %39 {offsets = [0, 256], sizes = [8, 128], strides = [1, 1]} : vector<8x384xf32> to vector<8x128xf32>
    %48 = math.tanh %46 : vector<8x128xf32>
    %49 = arith.mulf %47, %48 : vector<8x128xf32>
    %50 = tpu.concatenate %49, %49 in 1 : vector<8x128xf32>, vector<8x128xf32> -> vector<8x256xf32>
    %51 = arith.mulf %50, %6 : vector<8x256xf32>
    %52 = arith.truncf %51 : vector<8x256xf32> to vector<8x256xbf16>
    %cst_15 = arith.constant dense<0.000000e+00> : vector<8x512xf32>
    %53 = tpu.matmul %52, %5, %cst_15 {dimension_numbers = #tpu.dot_dimension_numbers<[1], [0], [0], [1], [0, 0, 1, 1], [], []>} : vector<8x256xbf16>, vector<256x512xbf16>, vector<8x512xf32> -> vector<8x512xf32>
    %54 = vector.extract_strided_slice %4 {offsets = [16, 0], sizes = [8, 512], strides = [1, 1]} : vector<64x512xf32> to vector<8x512xf32>
    %55 = arith.addf %54, %53 : vector<8x512xf32>
    %56 = vector.extract_strided_slice %55 {offsets = [0, 0], sizes = [8, 384], strides = [1, 1]} : vector<8x512xf32> to vector<8x384xf32>
    %57 = arith.negf %56 : vector<8x384xf32>
    %58 = math.exp %57 : vector<8x384xf32>
    %cst_16 = arith.constant 1.000000e+00 : f32
    %59 = vector.broadcast %cst_16 : f32 to vector<8x384xf32>
    %60 = arith.addf %59, %58 : vector<8x384xf32>
    %61 = arith.divf %59, %60 : vector<8x384xf32>
    %62 = vector.extract_strided_slice %55 {offsets = [0, 384], sizes = [8, 128], strides = [1, 1]} : vector<8x512xf32> to vector<8x128xf32>
    %63 = math.tanh %62 : vector<8x128xf32>
    %64 = vector.extract_strided_slice %61 {offsets = [0, 128], sizes = [8, 128], strides = [1, 1]} : vector<8x384xf32> to vector<8x128xf32>
    %65 = arith.mulf %64, %46 : vector<8x128xf32>
    %66 = vector.extract_strided_slice %61 {offsets = [0, 0], sizes = [8, 128], strides = [1, 1]} : vector<8x384xf32> to vector<8x128xf32>
    %67 = arith.mulf %66, %63 : vector<8x128xf32>
    %68 = arith.addf %65, %67 : vector<8x128xf32>
    %69 = vector.extract_strided_slice %61 {offsets = [0, 256], sizes = [8, 128], strides = [1, 1]} : vector<8x384xf32> to vector<8x128xf32>
    %70 = math.tanh %68 : vector<8x128xf32>
    %71 = arith.mulf %69, %70 : vector<8x128xf32>
    %72 = tpu.concatenate %71, %71 in 1 : vector<8x128xf32>, vector<8x128xf32> -> vector<8x256xf32>
    %73 = arith.mulf %72, %6 : vector<8x256xf32>
    %74 = arith.truncf %73 : vector<8x256xf32> to vector<8x256xbf16>
    %cst_17 = arith.constant dense<0.000000e+00> : vector<8x512xf32>
    %75 = tpu.matmul %74, %5, %cst_17 {dimension_numbers = #tpu.dot_dimension_numbers<[1], [0], [0], [1], [0, 0, 1, 1], [], []>} : vector<8x256xbf16>, vector<256x512xbf16>, vector<8x512xf32> -> vector<8x512xf32>
    %76 = vector.extract_strided_slice %4 {offsets = [24, 0], sizes = [8, 512], strides = [1, 1]} : vector<64x512xf32> to vector<8x512xf32>
    %77 = arith.addf %76, %75 : vector<8x512xf32>
    %78 = vector.extract_strided_slice %77 {offsets = [0, 0], sizes = [8, 384], strides = [1, 1]} : vector<8x512xf32> to vector<8x384xf32>
    %79 = arith.negf %78 : vector<8x384xf32>
    %80 = math.exp %79 : vector<8x384xf32>
    %cst_18 = arith.constant 1.000000e+00 : f32
    %81 = vector.broadcast %cst_18 : f32 to vector<8x384xf32>
    %82 = arith.addf %81, %80 : vector<8x384xf32>
    %83 = arith.divf %81, %82 : vector<8x384xf32>
    %84 = vector.extract_strided_slice %77 {offsets = [0, 384], sizes = [8, 128], strides = [1, 1]} : vector<8x512xf32> to vector<8x128xf32>
    %85 = math.tanh %84 : vector<8x128xf32>
    %86 = vector.extract_strided_slice %83 {offsets = [0, 128], sizes = [8, 128], strides = [1, 1]} : vector<8x384xf32> to vector<8x128xf32>
    %87 = arith.mulf %86, %68 : vector<8x128xf32>
    %88 = vector.extract_strided_slice %83 {offsets = [0, 0], sizes = [8, 128], strides = [1, 1]} : vector<8x384xf32> to vector<8x128xf32>
    %89 = arith.mulf %88, %85 : vector<8x128xf32>
    %90 = arith.addf %87, %89 : vector<8x128xf32>
    %91 = vector.extract_strided_slice %83 {offsets = [0, 256], sizes = [8, 128], strides = [1, 1]} : vector<8x384xf32> to vector<8x128xf32>
    %92 = math.tanh %90 : vector<8x128xf32>
    %93 = arith.mulf %91, %92 : vector<8x128xf32>
    %94 = tpu.concatenate %93, %93 in 1 : vector<8x128xf32>, vector<8x128xf32> -> vector<8x256xf32>
    %95 = arith.mulf %94, %6 : vector<8x256xf32>
    %96 = arith.truncf %95 : vector<8x256xf32> to vector<8x256xbf16>
    %cst_19 = arith.constant dense<0.000000e+00> : vector<8x512xf32>
    %97 = tpu.matmul %96, %5, %cst_19 {dimension_numbers = #tpu.dot_dimension_numbers<[1], [0], [0], [1], [0, 0, 1, 1], [], []>} : vector<8x256xbf16>, vector<256x512xbf16>, vector<8x512xf32> -> vector<8x512xf32>
    %98 = vector.extract_strided_slice %4 {offsets = [32, 0], sizes = [8, 512], strides = [1, 1]} : vector<64x512xf32> to vector<8x512xf32>
    %99 = arith.addf %98, %97 : vector<8x512xf32>
    %100 = vector.extract_strided_slice %99 {offsets = [0, 0], sizes = [8, 384], strides = [1, 1]} : vector<8x512xf32> to vector<8x384xf32>
    %101 = arith.negf %100 : vector<8x384xf32>
    %102 = math.exp %101 : vector<8x384xf32>
    %cst_20 = arith.constant 1.000000e+00 : f32
    %103 = vector.broadcast %cst_20 : f32 to vector<8x384xf32>
    %104 = arith.addf %103, %102 : vector<8x384xf32>
    %105 = arith.divf %103, %104 : vector<8x384xf32>
    %106 = vector.extract_strided_slice %99 {offsets = [0, 384], sizes = [8, 128], strides = [1, 1]} : vector<8x512xf32> to vector<8x128xf32>
    %107 = math.tanh %106 : vector<8x128xf32>
    %108 = vector.extract_strided_slice %105 {offsets = [0, 128], sizes = [8, 128], strides = [1, 1]} : vector<8x384xf32> to vector<8x128xf32>
    %109 = arith.mulf %108, %90 : vector<8x128xf32>
    %110 = vector.extract_strided_slice %105 {offsets = [0, 0], sizes = [8, 128], strides = [1, 1]} : vector<8x384xf32> to vector<8x128xf32>
    %111 = arith.mulf %110, %107 : vector<8x128xf32>
    %112 = arith.addf %109, %111 : vector<8x128xf32>
    %113 = vector.extract_strided_slice %105 {offsets = [0, 256], sizes = [8, 128], strides = [1, 1]} : vector<8x384xf32> to vector<8x128xf32>
    %114 = math.tanh %112 : vector<8x128xf32>
    %115 = arith.mulf %113, %114 : vector<8x128xf32>
    %116 = tpu.concatenate %115, %115 in 1 : vector<8x128xf32>, vector<8x128xf32> -> vector<8x256xf32>
    %117 = arith.mulf %116, %6 : vector<8x256xf32>
    %118 = arith.truncf %117 : vector<8x256xf32> to vector<8x256xbf16>
    %cst_21 = arith.constant dense<0.000000e+00> : vector<8x512xf32>
    %119 = tpu.matmul %118, %5, %cst_21 {dimension_numbers = #tpu.dot_dimension_numbers<[1], [0], [0], [1], [0, 0, 1, 1], [], []>} : vector<8x256xbf16>, vector<256x512xbf16>, vector<8x512xf32> -> vector<8x512xf32>
    %120 = vector.extract_strided_slice %4 {offsets = [40, 0], sizes = [8, 512], strides = [1, 1]} : vector<64x512xf32> to vector<8x512xf32>
    %121 = arith.addf %120, %119 : vector<8x512xf32>
    %122 = vector.extract_strided_slice %121 {offsets = [0, 0], sizes = [8, 384], strides = [1, 1]} : vector<8x512xf32> to vector<8x384xf32>
    %123 = arith.negf %122 : vector<8x384xf32>
    %124 = math.exp %123 : vector<8x384xf32>
    %cst_22 = arith.constant 1.000000e+00 : f32
    %125 = vector.broadcast %cst_22 : f32 to vector<8x384xf32>
    %126 = arith.addf %125, %124 : vector<8x384xf32>
    %127 = arith.divf %125, %126 : vector<8x384xf32>
    %128 = vector.extract_strided_slice %121 {offsets = [0, 384], sizes = [8, 128], strides = [1, 1]} : vector<8x512xf32> to vector<8x128xf32>
    %129 = math.tanh %128 : vector<8x128xf32>
    %130 = vector.extract_strided_slice %127 {offsets = [0, 128], sizes = [8, 128], strides = [1, 1]} : vector<8x384xf32> to vector<8x128xf32>
    %131 = arith.mulf %130, %112 : vector<8x128xf32>
    %132 = vector.extract_strided_slice %127 {offsets = [0, 0], sizes = [8, 128], strides = [1, 1]} : vector<8x384xf32> to vector<8x128xf32>
    %133 = arith.mulf %132, %129 : vector<8x128xf32>
    %134 = arith.addf %131, %133 : vector<8x128xf32>
    %135 = vector.extract_strided_slice %127 {offsets = [0, 256], sizes = [8, 128], strides = [1, 1]} : vector<8x384xf32> to vector<8x128xf32>
    %136 = math.tanh %134 : vector<8x128xf32>
    %137 = arith.mulf %135, %136 : vector<8x128xf32>
    %138 = tpu.concatenate %137, %137 in 1 : vector<8x128xf32>, vector<8x128xf32> -> vector<8x256xf32>
    %139 = arith.mulf %138, %6 : vector<8x256xf32>
    %140 = arith.truncf %139 : vector<8x256xf32> to vector<8x256xbf16>
    %cst_23 = arith.constant dense<0.000000e+00> : vector<8x512xf32>
    %141 = tpu.matmul %140, %5, %cst_23 {dimension_numbers = #tpu.dot_dimension_numbers<[1], [0], [0], [1], [0, 0, 1, 1], [], []>} : vector<8x256xbf16>, vector<256x512xbf16>, vector<8x512xf32> -> vector<8x512xf32>
    %142 = vector.extract_strided_slice %4 {offsets = [48, 0], sizes = [8, 512], strides = [1, 1]} : vector<64x512xf32> to vector<8x512xf32>
    %143 = arith.addf %142, %141 : vector<8x512xf32>
    %144 = vector.extract_strided_slice %143 {offsets = [0, 0], sizes = [8, 384], strides = [1, 1]} : vector<8x512xf32> to vector<8x384xf32>
    %145 = arith.negf %144 : vector<8x384xf32>
    %146 = math.exp %145 : vector<8x384xf32>
    %cst_24 = arith.constant 1.000000e+00 : f32
    %147 = vector.broadcast %cst_24 : f32 to vector<8x384xf32>
    %148 = arith.addf %147, %146 : vector<8x384xf32>
    %149 = arith.divf %147, %148 : vector<8x384xf32>
    %150 = vector.extract_strided_slice %143 {offsets = [0, 384], sizes = [8, 128], strides = [1, 1]} : vector<8x512xf32> to vector<8x128xf32>
    %151 = math.tanh %150 : vector<8x128xf32>
    %152 = vector.extract_strided_slice %149 {offsets = [0, 128], sizes = [8, 128], strides = [1, 1]} : vector<8x384xf32> to vector<8x128xf32>
    %153 = arith.mulf %152, %134 : vector<8x128xf32>
    %154 = vector.extract_strided_slice %149 {offsets = [0, 0], sizes = [8, 128], strides = [1, 1]} : vector<8x384xf32> to vector<8x128xf32>
    %155 = arith.mulf %154, %151 : vector<8x128xf32>
    %156 = arith.addf %153, %155 : vector<8x128xf32>
    %157 = vector.extract_strided_slice %149 {offsets = [0, 256], sizes = [8, 128], strides = [1, 1]} : vector<8x384xf32> to vector<8x128xf32>
    %158 = math.tanh %156 : vector<8x128xf32>
    %159 = arith.mulf %157, %158 : vector<8x128xf32>
    %160 = tpu.concatenate %159, %159 in 1 : vector<8x128xf32>, vector<8x128xf32> -> vector<8x256xf32>
    %161 = arith.mulf %160, %6 : vector<8x256xf32>
    %162 = arith.truncf %161 : vector<8x256xf32> to vector<8x256xbf16>
    %cst_25 = arith.constant dense<0.000000e+00> : vector<8x512xf32>
    %163 = tpu.matmul %162, %5, %cst_25 {dimension_numbers = #tpu.dot_dimension_numbers<[1], [0], [0], [1], [0, 0, 1, 1], [], []>} : vector<8x256xbf16>, vector<256x512xbf16>, vector<8x512xf32> -> vector<8x512xf32>
    %164 = vector.extract_strided_slice %4 {offsets = [56, 0], sizes = [8, 512], strides = [1, 1]} : vector<64x512xf32> to vector<8x512xf32>
    %165 = arith.addf %164, %163 : vector<8x512xf32>
    %166 = vector.extract_strided_slice %165 {offsets = [0, 0], sizes = [8, 384], strides = [1, 1]} : vector<8x512xf32> to vector<8x384xf32>
    %167 = arith.negf %166 : vector<8x384xf32>
    %168 = math.exp %167 : vector<8x384xf32>
    %cst_26 = arith.constant 1.000000e+00 : f32
    %169 = vector.broadcast %cst_26 : f32 to vector<8x384xf32>
    %170 = arith.addf %169, %168 : vector<8x384xf32>
    %171 = arith.divf %169, %170 : vector<8x384xf32>
    %172 = vector.extract_strided_slice %165 {offsets = [0, 384], sizes = [8, 128], strides = [1, 1]} : vector<8x512xf32> to vector<8x128xf32>
    %173 = math.tanh %172 : vector<8x128xf32>
    %174 = vector.extract_strided_slice %171 {offsets = [0, 128], sizes = [8, 128], strides = [1, 1]} : vector<8x384xf32> to vector<8x128xf32>
    %175 = arith.mulf %174, %156 : vector<8x128xf32>
    %176 = vector.extract_strided_slice %171 {offsets = [0, 0], sizes = [8, 128], strides = [1, 1]} : vector<8x384xf32> to vector<8x128xf32>
    %177 = arith.mulf %176, %173 : vector<8x128xf32>
    %178 = arith.addf %175, %177 : vector<8x128xf32>
    %179 = vector.extract_strided_slice %171 {offsets = [0, 256], sizes = [8, 128], strides = [1, 1]} : vector<8x384xf32> to vector<8x128xf32>
    %180 = math.tanh %178 : vector<8x128xf32>
    %181 = arith.mulf %179, %180 : vector<8x128xf32>
    %182 = tpu.concatenate %27, %49, %71, %93, %115, %137, %159, %181 in 0 : vector<8x128xf32>, vector<8x128xf32>, vector<8x128xf32>, vector<8x128xf32>, vector<8x128xf32>, vector<8x128xf32>, vector<8x128xf32>, vector<8x128xf32> -> vector<64x128xf32>
    %183 = arith.truncf %182 : vector<64x128xf32> to vector<64x128xbf16>
    %c0_27 = arith.constant 0 : index
    %c0_28 = arith.constant 0 : index
    %184 = vector.load %arg5[%c0_27, %c0_28] : memref<128x256xbf16, #tpu.memory_space<vmem>>, vector<128x256xbf16>
    %cst_29 = arith.constant dense<0.000000e+00> : vector<64x256xf32>
    %185 = tpu.matmul %183, %184, %cst_29 {dimension_numbers = #tpu.dot_dimension_numbers<[1], [0], [0], [1], [0, 0, 1, 1], [], []>} : vector<64x128xbf16>, vector<128x256xbf16>, vector<64x256xf32> -> vector<64x256xf32>
    %c0_30 = arith.constant 0 : index
    %c0_31 = arith.constant 0 : index
    %186 = vector.load %arg6[%c0_30, %c0_31] : memref<1x256xf32, #tpu.memory_space<vmem>>, vector<1x256xf32>
    %187 = vector.broadcast %186 : vector<1x256xf32> to vector<64x256xf32>
    %188 = arith.addf %185, %187 : vector<64x256xf32>
    %c0_32 = arith.constant 0 : index
    %c0_33 = arith.constant 0 : index
    %189 = vector.load %arg7[%c0_32, %c0_33] : memref<64x256xf32, #tpu.memory_space<vmem>>, vector<64x256xf32>
    tpu.vector_store %arg7[%c0_32, %c0_33], %188 {strides = array<i32>} : memref<64x256xf32, #tpu.memory_space<vmem>>, vector<64x256xf32>,
    return
  }
}

</mosaic_0001>

<bundles_post_ra>
// kernel: tpu_custom_call.1
= control target key start
LH: loop header
LB: loop body
LE: loop exit
PB: predicated region body
PF: predicated region fallthrough
CT: control target
= control target key end

     0   :  { %12 = vsyncpa [#allocation3], 0  ;;  %s3728_s0 = inlined_call_operand.hbm [shape: bf16[64,64], index: 0, kind: input, shape index: {}]   ;;  %s3729_s1 = inlined_call_operand.hbm [shape: bf16[64,512], index: 1, kind: input, shape index: {}]   ;;  %s3730_s2 = inlined_call_operand.hbm [shape: f32[64,512], index: 2, kind: input, shape index: {}]   ;;  %s3731_s3 = inlined_call_operand.hbm [shape: bf16[256,512], index: 3, kind: input, shape index: {}]   ;;  %s3732_s4 = inlined_call_operand.hbm [shape: f32[8,256], index: 4, kind: input, shape index: {}]   ;;  %s3733_s5 = inlined_call_operand.hbm [shape: bf16[128,256], index: 5, kind: input, shape index: {}]   ;;  %s3734_s6 = inlined_call_operand.vmem [shape: f32[1,256], index: 6, kind: input, shape index: {}]   ;;  %s3735_s7 = inlined_call_operand.hbm [shape: f32[64,256], index: 7, kind: output, shape index: {}]  }
   0x1   :  { %13 = vsyncpa [#allocation6], 0 }
   0x2   :  { %14 = vsyncpa [#allocation9], 0 }
   0x3   :  { %15 = vsyncpa [#allocation12], 0 }
   0x4   :  { %16 = vsyncpa [#allocation4], 0  ;;  %s2592_s24 = smov [#allocation5]   ;;  %s2428_s28 = scalar_lea.hbm %s3729_s1, 2048 }
   0x5   :  { %s34_s25 = sshll.u32 %s2592_s24, 4  ;;  %p2429_p0 = scmp.ne.s32.totalorder %s3729_s1, %s2428_s28  ;;  %s35_s25 = int_to_ptr.vmem [resolvable:$true] %s34_s25 }
   0x6   :  { %p2432_p1 = scmp.lt.u32.totalorder %s2428_s28, %s3729_s1 }
   0x8   :  { %p2434_p2 = pnand %p2432_p1, %p2429_p0 }
   0xa   :  { %2437 = shalt.err (!%p2434_p2)
}
   0xb   :  { %s2438_s10 = scalar_lea.vmem %s35_s25, 2048  ;;  %p2443_p4 = scmp.lt.s32.totalorder %s35_s25, %s35_s25 }
   0xc   :  { %p2439_p3 = scmp.ne.s32.totalorder %s35_s25, %s2438_s10  ;;  %p2444_p5 = scmp.lt.s32.totalorder %s2438_s10, %s2438_s10 }
   0xe   :  { %p2445_p6 = por %p2444_p5, %p2443_p4 }
  0x10   :  { %p2446_p7 = pnand %p2445_p6, %p2439_p3 }
  0x12   :  { %2449 = shalt.err (!%p2446_p7)
}
  0x13   :  { %s2593_s11 = smov 256   ;;  %s2594_s12 = smov 16  }
  0x14   :  { %40 = dma.hbm_to_vmem [thread:$0]  %s3729_s1, 2048, %s35_s25, [#allocation6], %s2593_s11, %s2593_s11, %s2594_s12  }
  0x15   :  { %s2595_s15 = smov [#allocation8]   ;;  %s2596_s17 = smov [#allocation2]  }
  0x16   :  { %s58_s16 = sshll.u32 %s2595_s15, 4  ;;  %s22_s18 = sshll.u32 %s2596_s17, 4  ;;  %s59_s16 = int_to_ptr.vmem [resolvable:$true] %s58_s16  ;;  %s23_s18 = int_to_ptr.vmem [resolvable:$true] %s22_s18 }
  0x17   :  { %s2450_s21 = scalar_lea.hbm %s3731_s3, 8192 }
  0x18   :  { %p2451_p8 = scmp.ne.s32.totalorder %s3731_s3, %s2450_s21  ;;  %p2454_p9 = scmp.lt.u32.totalorder %s2450_s21, %s3731_s3 }
  0x1a   :  { %p2456_p10 = pnand %p2454_p9, %p2451_p8 }
  0x1c   :  { %2459 = shalt.err (!%p2456_p10)
}
  0x1d   :  { %s2460_s1 = scalar_lea.vmem %s59_s16, 8192  ;;  %p2465_p12 = scmp.lt.s32.totalorder %s59_s16, %s59_s16 }
  0x1e   :  { %p2461_p11 = scmp.ne.s32.totalorder %s59_s16, %s2460_s1  ;;  %p2466_p13 = scmp.lt.s32.totalorder %s2460_s1, %s2460_s1 }
  0x20   :  { %p2467_p0 = por %p2466_p13, %p2465_p12 }
  0x22   :  { %p2468_p1 = pnand %p2467_p0, %p2461_p11 }
  0x24   :  { %2471 = shalt.err (!%p2468_p1)
}
  0x25   :  { %64 = dma.hbm_to_vmem [thread:$0]  %s3731_s3, 8192, %s59_s16, [#allocation9], %s2593_s11, %s2593_s11, %s2594_s12  }
  0x26   :  { %s2472_s30 = scalar_lea.hbm %s3728_s0, 512 }
  0x27   :  { %p2473_p2 = scmp.ne.s32.totalorder %s3728_s0, %s2472_s30  ;;  %p2476_p3 = scmp.lt.u32.totalorder %s2472_s30, %s3728_s0 }
  0x29   :  { %p2478_p4 = pnand %p2476_p3, %p2473_p2 }
  0x2b   :  { %2481 = shalt.err (!%p2478_p4)
}
  0x2c   :  { %s2482_s14 = scalar_lea.vmem %s23_s18, 512  ;;  %p2487_p6 = scmp.lt.s32.totalorder %s23_s18, %s23_s18 }
  0x2d   :  { %p2483_p5 = scmp.ne.s32.totalorder %s23_s18, %s2482_s14  ;;  %p2488_p7 = scmp.lt.s32.totalorder %s2482_s14, %s2482_s14 }
  0x2f   :  { %p2489_p8 = por %p2488_p7, %p2487_p6 }
  0x31   :  { %p2490_p9 = pnand %p2489_p8, %p2483_p5 }
  0x33   :  { %2493 = shalt.err (!%p2490_p9)
}
  0x34   :  { %s2597_s3 = smov 64   ;;  %s2598_s15 = smov 4  }
  0x35   :  { %28 = dma.hbm_to_vmem [thread:$0]  %s3728_s0, 512, %s23_s18, [#allocation3], %s2597_s3, %s2597_s3, %s2598_s15  }
  0x36   :  { %s2599_s19 = smov [#allocation7]   ;;  %s2494_s23 = scalar_lea.hbm %s3730_s2, 4096 }
  0x37   :  { %s46_s20 = sshll.u32 %s2599_s19, 4  ;;  %p2495_p10 = scmp.ne.s32.totalorder %s3730_s2, %s2494_s23  ;;  %s47_s20 = int_to_ptr.vmem [resolvable:$true] %s46_s20 }
  0x38   :  { %p2498_p11 = scmp.lt.u32.totalorder %s2494_s23, %s3730_s2 }
  0x3a   :  { %p2500_p12 = pnand %p2498_p11, %p2495_p10 }
  0x3c   :  { %2503 = shalt.err (!%p2500_p12)
}
  0x3d   :  { %s2504_s27 = scalar_lea.vmem %s47_s20, 4096  ;;  %p2509_p0 = scmp.lt.s32.totalorder %s47_s20, %s47_s20 }
  0x3e   :  { %p2505_p13 = scmp.ne.s32.totalorder %s47_s20, %s2504_s27  ;;  %p2510_p1 = scmp.lt.s32.totalorder %s2504_s27, %s2504_s27 }
  0x40   :  { %p2511_p2 = por %p2510_p1, %p2509_p0 }
  0x42   :  { %p2512_p3 = pnand %p2511_p2, %p2505_p13 }
  0x44   :  { %2515 = shalt.err (!%p2512_p3)
}
  0x45   :  { %s2600_s0 = smov 512   ;;  %s2601_s18 = smov 32  }
  0x46   :  { %52 = dma.hbm_to_vmem [thread:$0]  %s3730_s2, 4096, %s47_s20, [#allocation6], %s2600_s0, %s2600_s0, %s2601_s18  }
  0x47   :  { %s2602_s30 = smov [#allocation10]   ;;  %s2603_s9 = smov [#allocation11]  }
  0x48   :  { %s71_s8 = sshll.u32 %s2602_s30, 4  ;;  %s80_s10 = sshll.u32 %s2603_s9, 4  ;;  %s72_s8 = int_to_ptr.vmem [resolvable:$true] %s71_s8  ;;  %s2702_s10 = int_to_ptr.vmem [resolvable:$true] %s80_s10 }
  0x49   :  { %s2516_s3 = scalar_lea.hbm %s3732_s4, 256 }
  0x4a   :  { %p2517_p4 = scmp.ne.s32.totalorder %s3732_s4, %s2516_s3  ;;  %p2520_p5 = scmp.lt.u32.totalorder %s2516_s3, %s3732_s4 }
  0x4c   :  { %p2522_p6 = pnand %p2520_p5, %p2517_p4 }
  0x4e   :  { %2525 = shalt.err (!%p2522_p6)
}
  0x4f   :  { %s2526_s2 = scalar_lea.vmem %s72_s8, 256  ;;  %p2531_p8 = scmp.lt.s32.totalorder %s72_s8, %s72_s8 }
  0x50   :  { %p2527_p7 = scmp.ne.s32.totalorder %s72_s8, %s2526_s2  ;;  %p2532_p9 = scmp.lt.s32.totalorder %s2526_s2, %s2526_s2 }
  0x52   :  { %p2533_p10 = por %p2532_p9, %p2531_p8 }
  0x54   :  { %p2534_p11 = pnand %p2533_p10, %p2527_p7 }
  0x56   :  { %2537 = shalt.err (!%p2534_p11)
}
  0x57   :  { %74 = dma.hbm_to_vmem [thread:$0]  %s3732_s4, 256, %s72_s8, [#allocation9]  }
  0x58   :  { %s2538_s24 = scalar_lea.hbm %s3733_s5, 2048 }
  0x59   :  { %p2539_p12 = scmp.ne.s32.totalorder %s3733_s5, %s2538_s24  ;;  %p2542_p13 = scmp.lt.u32.totalorder %s2538_s24, %s3733_s5 }
  0x5b   :  { %p2544_p0 = pnand %p2542_p13, %p2539_p12 }
  0x5d   :  { %2547 = shalt.err (!%p2544_p0)
}
  0x5e   :  { %s2548_s0 = scalar_lea.vmem %s2702_s10, 2048  ;;  %p2553_p2 = scmp.lt.s32.totalorder %s2702_s10, %s2702_s10 }
  0x5f   :  { %p2549_p1 = scmp.ne.s32.totalorder %s2702_s10, %s2548_s0  ;;  %p2554_p3 = scmp.lt.s32.totalorder %s2548_s0, %s2548_s0 }
  0x61   :  { %p2555_p4 = por %p2554_p3, %p2553_p2 }
  0x63   :  { %p2556_p5 = pnand %p2555_p4, %p2549_p1 }
  0x65   :  { %2559 = shalt.err (!%p2556_p5)
}
  0x66   :  { %s2604_s4 = smov 128   ;;  %s2605_s18 = smov 8  }
  0x67   :  { %86 = dma.hbm_to_vmem [thread:$0]  %s3733_s5, 2048, %s2702_s10, [#allocation12], %s2604_s4, %s2604_s4, %s2605_s18  }
  0x68   :  { %2582 = dma.done.wait [#allocation3], 512  }
  0x69   :  { %2583 = vsyncadd [#allocation3], 4294966784 }
  0x6a   :  { %2584 = dma.done.wait [#allocation6], 6144  }
  0x6b   :  { %2585 = vsyncadd [#allocation6], 4294961152 }
  0x6c   :  { %2586 = dma.done.wait [#allocation9], 8448  }
  0x6d   :  { %2587 = vsyncadd [#allocation9], 4294958848 }
  0x6e   :  { %2588 = dma.done.wait [#allocation12], 2048  }
  0x6f   :  { %2589 = vsyncadd [#allocation12], 4294965248  ;;  %v3736_v0 = vmov 0   ;;  %v2086_v1 = vld [vmem:[#allocation5 + $0x4] ss:$16 sps:$4 sm:$0xff]   ;;  %vm264_vm0 = vcmask 523264  }
  0x70   :  { %309 = vmatprep.mubr.bf16.mxu1 %v3736_v0  ;;  %841 = vmatprep.mubr.bf16.mxu0 %v3736_v0  ;;  %v2735_v2 = vld [vmem:[#allocation8 + $0x4] ss:$16 sps:$4 sm:$0xff]   ;;  %v2090_v3 = vld [vmem:[#allocation5] ss:$16 sps:$4 sm:$0xff]   ;;  %v2113_v17 = vld [vmem:[#allocation5 + $0xc] ss:$16 sps:$4 sm:$0xff]  }
  0x71   :  { %3842 = vst [vmem:[#allocation19_spill] sm:$0xff] %v2735_v2  ;;  %277 = vmatprep.subr.bf16.mxu1 %v2086_v1  ;;  %v2737_v4 = vld [vmem:[#allocation8] ss:$16 sps:$4 sm:$0xff]   ;;  %809 = vmatprep.subr.bf16.mxu0 %v2735_v2  ;;  %v2092_v5 = vld [vmem:[#allocation5 + $0x24] ss:$16 sps:$4 sm:$0xff]   ;;  %v2777_v28 = vld [vmem:[#allocation2 + $0x8] sm:$0xff]  }
  0x72   :  { %278 = vmatpush1.bf16.msra.mxu1 %v2090_v3  ;;  %810 = vmatpush1.bf16.msra.mxu0 %v2737_v4  ;;  %v2741_v6 = vld [vmem:[#allocation8 + $0x24] ss:$16 sps:$4 sm:$0xff]   ;;  %v2096_v7 = vld [vmem:[#allocation5 + $0x20] ss:$16 sps:$4 sm:$0xff]   ;;  %v2111_v20 = vld [vmem:[#allocation5 + $0x8] ss:$16 sps:$4 sm:$0xff]  }
  0x73   :  { %279 = vmatprep.subr.bf16.mxu1 %v2092_v5  ;;  %v2743_v8 = vld [vmem:[#allocation8 + $0x20] ss:$16 sps:$4 sm:$0xff]   ;;  %811 = vmatprep.subr.bf16.mxu0 %v2741_v6  ;;  %v2098_v9 = vld [vmem:[#allocation5 + $0x44] ss:$16 sps:$4 sm:$0xff]   ;;  %v2123_v23 = vld [vmem:[#allocation5 + $0x2c] ss:$16 sps:$4 sm:$0xff]  }
  0x74   :  { %v2746_v10 = vld [vmem:[#allocation8 + $0x44] ss:$16 sps:$4 sm:$0xff]   ;;  %v2102_v11 = vld [vmem:[#allocation5 + $0x40] ss:$16 sps:$4 sm:$0xff]   ;;  %v2121_v25 = vld [vmem:[#allocation5 + $0x28] ss:$16 sps:$4 sm:$0xff]  }
  0x75   :  { %v2748_v12 = vld [vmem:[#allocation8 + $0x40] ss:$16 sps:$4 sm:$0xff]   ;;  %v2104_v13 = vld [vmem:[#allocation5 + $0x64] ss:$16 sps:$4 sm:$0xff]   ;;  %v2133_v27 = vld [vmem:[#allocation5 + $0x4c] ss:$16 sps:$4 sm:$0xff]  }
  0x76   :  { %280 = vmatpush1.bf16.msra.mxu1 %v2096_v7  ;;  %812 = vmatpush1.bf16.msra.mxu0 %v2743_v8  ;;  %v2752_v14 = vld [vmem:[#allocation8 + $0x64] ss:$16 sps:$4 sm:$0xff]   ;;  %v2108_v15 = vld [vmem:[#allocation5 + $0x60] ss:$16 sps:$4 sm:$0xff]   ;;  %v2131_v31 = vld [vmem:[#allocation5 + $0x48] ss:$16 sps:$4 sm:$0xff]  }
  0x77   :  { %281 = vmatprep.subr.bf16.mxu1 %v2098_v9  ;;  %813 = vmatprep.subr.bf16.mxu0 %v2746_v10  ;;  %v2755_v16 = vld [vmem:[#allocation8 + $0x60] ss:$16 sps:$4 sm:$0xff]   ;;  %v2758_v18 = vld [vmem:[#allocation8 + $0x84] ss:$16 sps:$4 sm:$0xff]   ;;  %v2143_v33 = vld [vmem:[#allocation5 + $0x6c] ss:$16 sps:$4 sm:$0xff]  }
  0x78   :  { %v2760_v19 = vld [vmem:[#allocation2] sm:$0xff]   ;;  %v2141_v35 = vld [vmem:[#allocation5 + $0x68] ss:$16 sps:$4 sm:$0xff]   ;;  %v2794_v36 = vld [vmem:[#allocation2 + $0x10] sm:$0xff]  }
  0x79   :  { %v2763_v21 = vld [vmem:[#allocation8 + $0x80] ss:$16 sps:$4 sm:$0xff]   ;;  %v2766_v22 = vld [vmem:[#allocation8 + $0xa4] ss:$16 sps:$4 sm:$0xff]   ;;  %v2796_v37 = vld [vmem:[#allocation8 + $0xc] ss:$16 sps:$4 sm:$0xff]  }
  0x7a   :  { %282 = vmatpush1.bf16.msra.mxu1 %v2102_v11  ;;  %814 = vmatpush1.bf16.msra.mxu0 %v2748_v12  ;;  %v2771_v24 = vld [vmem:[#allocation8 + $0xa0] ss:$16 sps:$4 sm:$0xff]   ;;  %v2775_v26 = vld [vmem:[#allocation8 + $0xc4] ss:$16 sps:$4 sm:$0xff]   ;;  %3843 = vst [vmem:[#allocation20_spill] sm:$0xff] %v2796_v37  ;;  %v2814_v42 = vld [vmem:[#allocation2 + $0x18] sm:$0xff]  }
  0x7b   :  { %283 = vmatprep.subr.bf16.mxu1 %v2104_v13  ;;  %815 = vmatprep.subr.bf16.mxu0 %v2752_v14  ;;  %v2780_v29 = vld [vmem:[#allocation8 + $0xc0] ss:$16 sps:$4 sm:$0xff]   ;;  %v2783_v30 = vld [vmem:[#allocation8 + $0xe4] ss:$16 sps:$4 sm:$0xff]   ;;  %v2831_v47 = vld [vmem:[#allocation8 + $0x8] ss:$16 sps:$4 sm:$0xff]  }
  0x7c   :  { %v2787_v32 = vld [vmem:[#allocation8 + $0xe0] ss:$16 sps:$4 sm:$0xff]   ;;  %v2791_v34 = vld [vmem:[#allocation8 + $0x104] ss:$16 sps:$4 sm:$0xff]   ;;  %v2836_v49 = vld [vmem:[#allocation8 + $0x2c] ss:$16 sps:$4 sm:$0xff]  }
  0x7d   :  { %v2799_v38 = vld [vmem:[#allocation8 + $0x100] ss:$16 sps:$4 sm:$0xff]   ;;  %v2802_v39 = vld [vmem:[#allocation8 + $0x124] ss:$16 sps:$4 sm:$0xff]   ;;  %v2843_v51 = vld [vmem:[#allocation8 + $0x28] ss:$16 sps:$4 sm:$0xff]  }
  0x7e   :  { %284 = vmatpush1.bf16.msra.mxu1 %v2108_v15  ;;  %816 = vmatpush1.bf16.msra.mxu0 %v2755_v16  ;;  %v2808_v40 = vld [vmem:[#allocation8 + $0x120] ss:$16 sps:$4 sm:$0xff]   ;;  %v2812_v41 = vld [vmem:[#allocation8 + $0x144] ss:$16 sps:$4 sm:$0xff]   ;;  %v2849_v53 = vld [vmem:[#allocation8 + $0x4c] ss:$16 sps:$4 sm:$0xff]  }
  0x7f   :  { %350 = vmatprep.subr.bf16.mxu1 %v2113_v17  ;;  %817 = vmatprep.subr.bf16.mxu0 %v2758_v18  ;;  %3844 = vst [vmem:[#allocation21_spill] sm:$0xff] %v2808_v40  ;;  %v2817_v43 = vld [vmem:[#allocation8 + $0x140] ss:$16 sps:$4 sm:$0xff]   ;;  %v2820_v44 = vld [vmem:[#allocation8 + $0x164] ss:$16 sps:$4 sm:$0xff]  }
  0x80   :  { %v2825_v45 = vld [vmem:[#allocation8 + $0x160] ss:$16 sps:$4 sm:$0xff]   ;;  %v2829_v46 = vld [vmem:[#allocation8 + $0x184] ss:$16 sps:$4 sm:$0xff]   ;;  %v2856_v55 = vld [vmem:[#allocation8 + $0x48] ss:$16 sps:$4 sm:$0xff]  }
  0x81   :  { %1958 = vmatmul.mubr.msk.bf16.vlgmr.msra.gmra.mrb[0].mxu1 %vm264_vm0, %v2760_v19  ;;  %3845 = vst [vmem:[#allocation22_spill] sm:$0xff] %v2825_v45  ;;  %3846 = vst [vmem:[#allocation23_spill] sm:$0xff] %v2829_v46  ;;  %v2833_v48 = vld [vmem:[#allocation8 + $0x180] ss:$16 sps:$4 sm:$0xff]   ;;  %v2839_v50 = vld [vmem:[#allocation8 + $0x1a4] ss:$16 sps:$4 sm:$0xff]  }
  0x82   :  { %351 = vmatpush1.bf16.msra.mxu1 %v2111_v20  ;;  %818 = vmatpush1.bf16.msra.mxu0 %v2763_v21  ;;  %3847 = vst [vmem:[#allocation24_spill] sm:$0xff] %v2833_v48  ;;  %3848 = vst [vmem:[#allocation25_spill] sm:$0xff] %v2839_v50  ;;  %v2845_v52 = vld [vmem:[#allocation8 + $0x1a0] ss:$16 sps:$4 sm:$0xff]   ;;  %v2853_v54 = vld [vmem:[#allocation8 + $0x1c4] ss:$16 sps:$4 sm:$0xff]  }
  0x83   :  { %819 = vmatprep.subr.bf16.mxu0 %v2766_v22  ;;  %319 = vmatprep.mubr.bf16.mxu1 %v3736_v0  ;;  %3849 = vst [vmem:[#allocation26_spill] sm:$0xff] %v2845_v52  ;;  %3850 = vst [vmem:[#allocation27_spill] sm:$0xff] %v2853_v54  ;;  %v2860_v56 = vld [vmem:[#allocation8 + $0x1c0] ss:$16 sps:$4 sm:$0xff]   ;;  %v2864_v57 = vld [vmem:[#allocation8 + $0x6c] ss:$16 sps:$4 sm:$0xff]  }
  0x84   :  { %352 = vmatprep.subr.bf16.mxu1 %v2123_v23  ;;  %3851 = vst [vmem:[#allocation28_spill] sm:$0xff] %v2860_v56  ;;  %v2866_v58 = vld [vmem:[#allocation8 + $0x1e4] ss:$16 sps:$4 sm:$0xff]   ;;  %v2868_v59 = vld [vmem:[#allocation8 + $0x68] ss:$16 sps:$4 sm:$0xff]  }
  0x85   :  { %3852 = vst [vmem:[#allocation29_spill] sm:$0xff] %v2866_v58  ;;  %v2870_v60 = vld [vmem:[#allocation8 + $0x1e0] ss:$16 sps:$4 sm:$0xff]   ;;  %v2872_v61 = vld [vmem:[#allocation8 + $0x8c] ss:$16 sps:$4 sm:$0xff]  }
  0x86   :  { %820 = vmatpush1.bf16.msra.mxu0 %v2771_v24  ;;  %353 = vmatpush1.bf16.msra.mxu1 %v2121_v25  ;;  %3853 = vst [vmem:[#allocation30_spill] sm:$0xff] %v2870_v60  ;;  %v2883_v62 = vld [vmem:[#allocation8 + $0x88] ss:$16 sps:$4 sm:$0xff]   ;;  %v2886_v63 = vld [vmem:[#allocation8 + $0xac] ss:$16 sps:$4 sm:$0xff]  }
  0x87   :  { %821 = vmatprep.subr.bf16.mxu0 %v2775_v26  ;;  %354 = vmatprep.subr.bf16.mxu1 %v2133_v27  ;;  %v2893_v1 = vld [vmem:[#allocation8 + $0xa8] ss:$16 sps:$4 sm:$0xff]   ;;  %v2897_v3 = vld [vmem:[#allocation8 + $0xcc] ss:$16 sps:$4 sm:$0xff]  }
  0x88   :  { %v2902_v5 = vld [vmem:[#allocation8 + $0xc8] ss:$16 sps:$4 sm:$0xff]   ;;  %v2905_v7 = vld [vmem:[#allocation8 + $0xec] ss:$16 sps:$4 sm:$0xff]  }
  0x89   :  { %1959 = vmatmul.mubr.msk.bf16.gmra.mrb[4].mxu1 %vm264_vm0, %v2777_v28  ;;  %v2912_v9 = vld [vmem:[#allocation8 + $0xe8] ss:$16 sps:$4 sm:$0xff]   ;;  %v2916_v11 = vld [vmem:[#allocation8 + $0x10c] ss:$16 sps:$4 sm:$0xff]  }
  0x8a   :  { %822 = vmatpush1.bf16.msra.mxu0 %v2780_v29  ;;  %329 = vmatprep.mubr.bf16.mxu1 %v3736_v0  ;;  %v2921_v13 = vld [vmem:[#allocation8 + $0x108] ss:$16 sps:$4 sm:$0xff]   ;;  %v2924_v15 = vld [vmem:[#allocation8 + $0x12c] ss:$16 sps:$4 sm:$0xff]  }
  0x8b   :  { %823 = vmatprep.subr.bf16.mxu0 %v2783_v30  ;;  %355 = vmatpush1.bf16.msra.mxu1 %v2131_v31  ;;  %v2929_v17 = vld [vmem:[#allocation8 + $0x128] ss:$16 sps:$4 sm:$0xff]   ;;  %v2940_v23 = vld [vmem:[#allocation8 + $0x16c] ss:$16 sps:$4 sm:$0xff]  }
  0x8c   :  { %356 = vmatprep.subr.bf16.mxu1 %v2143_v33  ;;  %v2937_v20 = vld [vmem:[#allocation8 + $0x148] ss:$16 sps:$4 sm:$0xff]   ;;  %3854 = vst [vmem:[#allocation31_spill] sm:$0xff] %v2940_v23  ;;  %v2948_v27 = vld [vmem:[#allocation8 + $0x18c] ss:$16 sps:$4 sm:$0xff]  }
  0x8d   :  { %v2945_v25 = vld [vmem:[#allocation8 + $0x168] ss:$16 sps:$4 sm:$0xff]   ;;  %3856 = vst [vmem:[#allocation33_spill] sm:$0xff] %v2948_v27  ;;  %v2956_v31 = vld [vmem:[#allocation8 + $0x1ac] ss:$16 sps:$4 sm:$0xff]  }
  0x8e   :  { %824 = vmatpush1.bf16.msra.mxu0 %v2787_v32  ;;  %3855 = vst [vmem:[#allocation32_spill] sm:$0xff] %v2945_v25  ;;  %3858 = vst [vmem:[#allocation35_spill] sm:$0xff] %v2956_v31  ;;  %v2961_v33 = vld [vmem:[#allocation8 + $0x1a8] ss:$16 sps:$4 sm:$0xff]  }
  0x8f   :  { %825 = vmatprep.subr.bf16.mxu0 %v2791_v34  ;;  %357 = vmatpush1.bf16.msra.mxu1 %v2141_v35  ;;  %3859 = vst [vmem:[#allocation36_spill] sm:$0xff] %v2961_v33  ;;  %v2964_v35 = vld [vmem:[#allocation8 + $0x1cc] ss:$16 sps:$4 sm:$0xff]  }
  0x90   :  { %850 = vmatprep.subr.bf16.mxu1 %v2796_v37  ;;  %3860 = vst [vmem:[#allocation37_spill] sm:$0xff] %v2964_v35 }
  0x91   :  { %1960 = vmatmul.mubr.msk.bf16.gmra.mrb[8].mxu1 %vm264_vm0, %v2794_v36 }
  0x92   :  { %826 = vmatpush1.bf16.msra.mxu0 %v2799_v38  ;;  %339 = vmatprep.mubr.bf16.mxu1 %v3736_v0 }
  0x93   :  { %827 = vmatprep.subr.bf16.mxu0 %v2802_v39 }
  0x96   :  { %828 = vmatpush1.bf16.msra.mxu0 %v2808_v40 }
  0x97   :  { %829 = vmatprep.subr.bf16.mxu0 %v2812_v41 }
  0x99   :  { %1961 = vmatmul.mubr.msk.bf16.gmra.mrb[12].mxu1 %vm264_vm0, %v2814_v42 }
  0x9a   :  { %830 = vmatpush1.bf16.msra.mxu0 %v2817_v43  ;;  %382 = vmatprep.mubr.bf16.mxu1 %v3736_v0 }
  0x9b   :  { %831 = vmatprep.subr.bf16.mxu0 %v2820_v44 }
  0x9e   :  { %832 = vmatpush1.bf16.msra.mxu0 %v2825_v45 }
  0x9f   :  { %833 = vmatprep.subr.bf16.mxu0 %v2829_v46 }
  0xa1   :  { %1962 = vmatmul.mubr.msk.bf16.vlgmr.msra.gmra.mrb[16].mxu1 %vm264_vm0, %v2760_v19  ;;  %v2932_v19 = vld [vmem:[#allocation8 + $0x14c] ss:$16 sps:$4 sm:$0xff]  }
  0xa2   :  { %851 = vmatpush1.bf16.msra.mxu1 %v2831_v47  ;;  %834 = vmatpush1.bf16.msra.mxu0 %v2833_v48 }
  0xa3   :  { %852 = vmatprep.subr.bf16.mxu1 %v2836_v49  ;;  %835 = vmatprep.subr.bf16.mxu0 %v2839_v50 }
  0xa4   :  { %392 = vmatprep.mubr.bf16.mxu1 %v3736_v0 }
  0xa6   :  { %853 = vmatpush1.bf16.msra.mxu1 %v2843_v51  ;;  %836 = vmatpush1.bf16.msra.mxu0 %v2845_v52 }
  0xa7   :  { %854 = vmatprep.subr.bf16.mxu1 %v2849_v53  ;;  %837 = vmatprep.subr.bf16.mxu0 %v2853_v54 }
  0xa9   :  { %1963 = vmatmul.mubr.msk.bf16.gmra.mrb[20].mxu1 %vm264_vm0, %v2777_v28  ;;  %v2953_v28 = vld [vmem:[#allocation8 + $0x188] ss:$16 sps:$4 sm:$0xff]  }
  0xaa   :  { %855 = vmatpush1.bf16.msra.mxu1 %v2856_v55  ;;  %838 = vmatpush1.bf16.msra.mxu0 %v2860_v56  ;;  %3857 = vst [vmem:[#allocation34_spill] sm:$0xff] %v2953_v28 }
  0xab   :  { %856 = vmatprep.subr.bf16.mxu1 %v2864_v57  ;;  %839 = vmatprep.subr.bf16.mxu0 %v2866_v58 }
  0xac   :  { %402 = vmatprep.mubr.bf16.mxu1 %v3736_v0 }
  0xae   :  { %857 = vmatpush1.bf16.msra.mxu1 %v2868_v59  ;;  %840 = vmatpush1.bf16.msra.mxu0 %v2870_v60 }
  0xaf   :  { %858 = vmatprep.subr.bf16.mxu1 %v2872_v61  ;;  %923 = vmatprep.subr.bf16.mxu0 %v2735_v2 }
  0xb1   :  { %842 = vmatmul.mubr.bf16.vlgmr.msra.gmra.mrb[0].mxu0 %v3736_v0  ;;  %1964 = vmatmul.mubr.msk.bf16.gmra.mrb[24].mxu1 %vm264_vm0, %v2794_v36  ;;  %v2969_v36 = vld [vmem:[#allocation8 + $0x1c8] ss:$16 sps:$4 sm:$0xff]  }
  0xb2   :  { %859 = vmatpush1.bf16.msra.mxu1 %v2883_v62  ;;  %412 = vmatprep.mubr.bf16.mxu1 %v3736_v0  ;;  %3861 = vst [vmem:[#allocation38_spill] sm:$0xff] %v2969_v36 }
  0xb3   :  { %860 = vmatprep.subr.bf16.mxu1 %v2886_v63  ;;  %924 = vmatpush1.bf16.msra.mxu0 %v2737_v4 }
  0xb4   :  { %925 = vmatprep.subr.bf16.mxu0 %v2741_v6 }
  0xb6   :  { %861 = vmatpush1.bf16.msra.mxu1 %v2893_v1 }
  0xb7   :  { %862 = vmatprep.subr.bf16.mxu1 %v2897_v3  ;;  %926 = vmatpush1.bf16.msra.mxu0 %v2743_v8 }
  0xb8   :  { %927 = vmatprep.subr.bf16.mxu0 %v2746_v10 }
  0xb9   :  { %1965 = vmatmul.mubr.msk.bf16.gmra.mrb[28].mxu1 %vm264_vm0, %v2814_v42  ;;  %v2972_v42 = vld [vmem:[#allocation8 + $0x1ec] ss:$16 sps:$4 sm:$0xff]  }
  0xba   :  { %863 = vmatpush1.bf16.msra.mxu1 %v2902_v5  ;;  %882 = vmatprep.mubr.bf16.mxu1 %v3736_v0  ;;  %3862 = vst [vmem:[#allocation39_spill] sm:$0xff] %v2972_v42  ;;  %v2977_v0 = vld [vmem:[#allocation8 + $0x1e8] ss:$16 sps:$4 sm:$0xff]  }
  0xbb   :  { %864 = vmatprep.subr.bf16.mxu1 %v2905_v7  ;;  %928 = vmatpush1.bf16.msra.mxu0 %v2748_v12  ;;  %3863 = vst [vmem:[#allocation40_spill] sm:$0xff] %v2977_v0 }
  0xbc   :  { %929 = vmatprep.subr.bf16.mxu0 %v2752_v14 }
  0xbe   :  { %865 = vmatpush1.bf16.msra.mxu1 %v2912_v9 }
  0xbf   :  { %866 = vmatprep.subr.bf16.mxu1 %v2916_v11  ;;  %930 = vmatpush1.bf16.msra.mxu0 %v2755_v16 }
  0xc0   :  { %931 = vmatprep.subr.bf16.mxu0 %v2758_v18 }
  0xc2   :  { %867 = vmatpush1.bf16.msra.mxu1 %v2921_v13 }
  0xc3   :  { %868 = vmatprep.subr.bf16.mxu1 %v2924_v15  ;;  %932 = vmatpush1.bf16.msra.mxu0 %v2763_v21 }
  0xc4   :  { %933 = vmatprep.subr.bf16.mxu0 %v2766_v22 }
  0xc6   :  { %869 = vmatpush1.bf16.msra.mxu1 %v2929_v17 }
  0xc7   :  { %870 = vmatprep.subr.bf16.mxu1 %v2932_v19  ;;  %934 = vmatpush1.bf16.msra.mxu0 %v2771_v24 }
  0xc8   :  { %935 = vmatprep.subr.bf16.mxu0 %v2775_v26 }
  0xca   :  { %871 = vmatpush1.bf16.msra.mxu1 %v2937_v20 }
  0xcb   :  { %872 = vmatprep.subr.bf16.mxu1 %v2940_v23  ;;  %936 = vmatpush1.bf16.msra.mxu0 %v2780_v29 }
  0xcc   :  { %937 = vmatprep.subr.bf16.mxu0 %v2783_v30 }
  0xce   :  { %873 = vmatpush1.bf16.msra.mxu1 %v2945_v25 }
  0xcf   :  { %874 = vmatprep.subr.bf16.mxu1 %v2948_v27  ;;  %938 = vmatpush1.bf16.msra.mxu0 %v2787_v32 }
  0xd0   :  { %939 = vmatprep.subr.bf16.mxu0 %v2791_v34 }
  0xd2   :  { %875 = vmatpush1.bf16.msra.mxu1 %v2953_v28 }
  0xd3   :  { %876 = vmatprep.subr.bf16.mxu1 %v2956_v31  ;;  %940 = vmatpush1.bf16.msra.mxu0 %v2799_v38 }
  0xd4   :  { %941 = vmatprep.subr.bf16.mxu0 %v2802_v39 }
  0xd6   :  { %877 = vmatpush1.bf16.msra.mxu1 %v2961_v33 }
  0xd7   :  { %878 = vmatprep.subr.bf16.mxu1 %v2964_v35  ;;  %942 = vmatpush1.bf16.msra.mxu0 %v2808_v40  ;;  %v3864_v40 = vmov 0  }
  0xd8   :  { %943 = vmatprep.subr.bf16.mxu0 %v2812_v41 }
  0xda   :  { %879 = vmatpush1.bf16.msra.mxu1 %v2969_v36 }
  0xdb   :  { %880 = vmatprep.subr.bf16.mxu1 %v2972_v42  ;;  %944 = vmatpush1.bf16.msra.mxu0 %v2817_v43 }
  0xdc   :  { %945 = vmatprep.subr.bf16.mxu0 %v2820_v44 }
  0xde   :  { %881 = vmatpush1.bf16.msra.mxu1 %v2977_v0 }
  0xdf   :  { %964 = vmatprep.subr.bf16.mxu1 %v2796_v37  ;;  %946 = vmatpush1.bf16.msra.mxu0 %v2825_v45 }
  0xe0   :  { %947 = vmatprep.subr.bf16.mxu0 %v2829_v46 }
  0xe1   :  { %883 = vmatmul.mubr.bf16.vlgmr.msra.gmra.mrb[32].mxu1 %v3864_v40 }
  0xe2   :  { %965 = vmatpush1.bf16.msra.mxu1 %v2831_v47 }
  0xe3   :  { %966 = vmatprep.subr.bf16.mxu1 %v2836_v49  ;;  %948 = vmatpush1.bf16.msra.mxu0 %v2833_v48 }
  0xe4   :  { %949 = vmatprep.subr.bf16.mxu0 %v2839_v50 }
  0xe6   :  { %967 = vmatpush1.bf16.msra.mxu1 %v2843_v51 }
  0xe7   :  { %968 = vmatprep.subr.bf16.mxu1 %v2849_v53  ;;  %950 = vmatpush1.bf16.msra.mxu0 %v2845_v52 }
  0xe8   :  { %951 = vmatprep.subr.bf16.mxu0 %v2853_v54 }
  0xea   :  { %969 = vmatpush1.bf16.msra.mxu1 %v2856_v55 }
  0xeb   :  { %970 = vmatprep.subr.bf16.mxu1 %v2864_v57  ;;  %952 = vmatpush1.bf16.msra.mxu0 %v2860_v56 }
  0xec   :  { %953 = vmatprep.subr.bf16.mxu0 %v2866_v58 }
  0xee   :  { %971 = vmatpush1.bf16.msra.mxu1 %v2868_v59 }
  0xef   :  { %972 = vmatprep.subr.bf16.mxu1 %v2872_v61  ;;  %954 = vmatpush1.bf16.msra.mxu0 %v2870_v60 }
  0xf0   :  { %1037 = vmatprep.subr.bf16.mxu0 %v2735_v2 }
  0xf2   :  { %973 = vmatpush1.bf16.msra.mxu1 %v2883_v62 }
  0xf3   :  { %974 = vmatprep.subr.bf16.mxu1 %v2886_v63 }
  0xf6   :  { %975 = vmatpush1.bf16.msra.mxu1 %v2893_v1 }
  0xf7   :  { %976 = vmatprep.subr.bf16.mxu1 %v2897_v3 }
  0xfa   :  { %977 = vmatpush1.bf16.msra.mxu1 %v2902_v5 }
  0xfb   :  { %978 = vmatprep.subr.bf16.mxu1 %v2905_v7 }
  0xfe   :  { %979 = vmatpush1.bf16.msra.mxu1 %v2912_v9 }
  0xff   :  { %980 = vmatprep.subr.bf16.mxu1 %v2916_v11 }
 0x102   :  { %981 = vmatpush1.bf16.msra.mxu1 %v2921_v13 }
 0x103   :  { %982 = vmatprep.subr.bf16.mxu1 %v2924_v15 }
 0x106   :  { %983 = vmatpush1.bf16.msra.mxu1 %v2929_v17 }
 0x107   :  { %984 = vmatprep.subr.bf16.mxu1 %v2932_v19 }
 0x10a   :  { %985 = vmatpush1.bf16.msra.mxu1 %v2937_v20 }
 0x10b   :  { %986 = vmatprep.subr.bf16.mxu1 %v2940_v23 }
 0x10e   :  { %987 = vmatpush1.bf16.msra.mxu1 %v2945_v25 }
 0x10f   :  { %988 = vmatprep.subr.bf16.mxu1 %v2948_v27 }
 0x112   :  { %989 = vmatpush1.bf16.msra.mxu1 %v2953_v28 }
 0x113   :  { %990 = vmatprep.subr.bf16.mxu1 %v2956_v31 }
 0x116   :  { %991 = vmatpush1.bf16.msra.mxu1 %v2961_v33 }
 0x117   :  { %992 = vmatprep.subr.bf16.mxu1 %v2964_v35 }
 0x11a   :  { %993 = vmatpush1.bf16.msra.mxu1 %v2969_v36 }
 0x11b   :  { %994 = vmatprep.subr.bf16.mxu1 %v2972_v42 }
 0x11e   :  { %995 = vmatpush1.bf16.msra.mxu1 %v2977_v0 }
 0x11f   :  { %1078 = vmatprep.subr.bf16.mxu1 %v2796_v37 }
 0x154   :  { %v311_v40 = vpop.f32.mrb[0].mxu1 }
 0x155   :  { %v313_v2 = vpop.f32.mrb[1].mxu1 }
 0x156   :  { %v3027_v60 = vpop.f32.mrb[2].mxu1 }
 0x157   :  { %3865 = vst [vmem:[#allocation41_spill] sm:$0xff] %v3027_v60  ;;  %v3029_v58 = vpop.f32.mrb[3].mxu1 }
 0x158   :  { %3866 = vst [vmem:[#allocation42_spill] sm:$0xff] %v3029_v58 }
 0x15c   :  { %v3031_v56 = vpop.f32.mrb[4].mxu1 }
 0x15d   :  { %3867 = vst [vmem:[#allocation43_spill] sm:$0xff] %v3031_v56  ;;  %v3033_v54 = vpop.f32.mrb[5].mxu1 }
 0x15e   :  { %3868 = vst [vmem:[#allocation44_spill] sm:$0xff] %v3033_v54  ;;  %v3035_v33 = vpop.f32.mrb[6].mxu1 }
 0x15f   :  { %3869 = vst [vmem:[#allocation45_spill] sm:$0xff] %v3035_v33  ;;  %v3037_v35 = vpop.f32.mrb[7].mxu1 }
 0x160   :  { %3870 = vst [vmem:[#allocation46_spill] sm:$0xff] %v3037_v35 }
 0x164   :  { %v3039_v36 = vpop.f32.mrb[8].mxu1 }
 0x165   :  { %3871 = vst [vmem:[#allocation47_spill] sm:$0xff] %v3039_v36  ;;  %v3041_v42 = vpop.f32.mrb[9].mxu1 }
 0x166   :  { %3872 = vst [vmem:[#allocation48_spill] sm:$0xff] %v3041_v42  ;;  %v3043_v0 = vpop.f32.mrb[10].mxu1 }
 0x167   :  { %3873 = vst [vmem:[#allocation49_spill] sm:$0xff] %v3043_v0  ;;  %v3045_v37 = vpop.f32.mrb[11].mxu1 }
 0x168   :  { %3874 = vst [vmem:[#allocation50_spill] sm:$0xff] %v3045_v37 }
 0x16c   :  { %v3047_v52 = vpop.f32.mrb[12].mxu1 }
 0x16d   :  { %3875 = vst [vmem:[#allocation51_spill] sm:$0xff] %v3047_v52  ;;  %v3049_v60 = vpop.f32.mrb[13].mxu1  ;;  %v132_v52 = vld [vmem:[#allocation7] sm:$0xff] }
 0x16e   :  { %3876 = vst [vmem:[#allocation52_spill] sm:$0xff] %v3049_v60  ;;  %v3051_v58 = vpop.f32.mrb[14].mxu1  ;;  %v133_v60 = vld [vmem:[#allocation7 + $0x8] sm:$0xff]  ;;  %v312_v50 = vadd.f32 %v311_v40, %v132_v52 }
 0x16f   :  { %3877 = vst [vmem:[#allocation53_spill] sm:$0xff] %v3051_v58  ;;  %v3053_v56 = vpop.f32.mrb[15].mxu1  ;;  %v314_v58 = vadd.f32 %v313_v2, %v133_v60 }
 0x170   :  { %3878 = vst [vmem:[#allocation54_spill] sm:$0xff] %v3053_v56 }
 0x174   :  { %v384_v54 = vpop.f32.mrb[16].mxu1 }
 0x175   :  { %v386_v33 = vpop.f32.mrb[17].mxu1 }
 0x176   :  { %v3055_v31 = vpop.f32.mrb[18].mxu1 }
 0x177   :  { %3879 = vst [vmem:[#allocation55_spill] sm:$0xff] %v3055_v31  ;;  %v3057_v35 = vpop.f32.mrb[19].mxu1 }
 0x178   :  { %3880 = vst [vmem:[#allocation56_spill] sm:$0xff] %v3057_v35 }
 0x17c   :  { %v3059_v36 = vpop.f32.mrb[20].mxu1 }
 0x17d   :  { %3881 = vst [vmem:[#allocation57_spill] sm:$0xff] %v3059_v36  ;;  %v3061_v42 = vpop.f32.mrb[21].mxu1 }
 0x17e   :  { %3882 = vst [vmem:[#allocation58_spill] sm:$0xff] %v3061_v42  ;;  %v3063_v0 = vpop.f32.mrb[22].mxu1 }
 0x17f   :  { %3883 = vst [vmem:[#allocation59_spill] sm:$0xff] %v3063_v0  ;;  %v3065_v37 = vpop.f32.mrb[23].mxu1 }
 0x180   :  { %3884 = vst [vmem:[#allocation60_spill] sm:$0xff] %v3065_v37 }
 0x184   :  { %v843_v28 = vpop.f32.mrb[0].mxu0  ;;  %v3067_v56 = vpop.f32.mrb[24].mxu1 }
 0x185   :  { %3885 = vst [vmem:[#allocation61_spill] sm:$0xff] %v3067_v56  ;;  %v891_v48 = vadd.f32 %v843_v28, %v312_v50  ;;  %v845_v27 = vpop.f32.mrb[1].mxu0  ;;  %v3069_v31 = vpop.f32.mrb[25].mxu1  ;;  %v135_v28 = vld [vmem:[#allocation7 + $0x18] sm:$0xff] }
 0x186   :  { %3886 = vst [vmem:[#allocation62_spill] sm:$0xff] %v3069_v31  ;;  %v892_v35 = vadd.f32 %v845_v27, %v314_v58  ;;  %v3071_v46 = vpop.f32.mrb[26].mxu1  ;;  %v847_v36 = vpop.f32.mrb[2].mxu0  ;;  %v134_v27 = vld [vmem:[#allocation7 + $0x10] sm:$0xff] }
 0x187   :  { %3887 = vst [vmem:[#allocation63_spill] sm:$0xff] %v3071_v46  ;;  %v3073_v42 = vpop.f32.mrb[27].mxu1  ;;  %v848_v0 = vpop.f32.mrb[3].mxu0  ;;  %v2030_v50 = vmul.f32 -1.442695, %v891_v48  ;;  %v385_v46 = vadd.f32 %v384_v54, %v134_v27  ;;  %v3905_v27 = vld [vmem:[#allocation36_spill] sm:$0xff] }
 0x188   :  { %3888 = vst [vmem:[#allocation64_spill] sm:$0xff] %v3073_v42  ;;  %v2031_v52 = vmul.f32 -1.442695, %v892_v35  ;;  %v387_v0 = vadd.f32 %v386_v33, %v135_v28  ;;  %v3906_v28 = vld [vmem:[#allocation27_spill] sm:$0xff] }
 0x18a   :  { %2234 = vpow2.f32 %v2031_v52 }
 0x18b   :  { %2236 = vpow2.f32 %v2030_v50 }
 0x18c   :  { %v3075_v25 = vpop.f32.mrb[28].mxu1 }
 0x18d   :  { %3889 = vst [vmem:[#allocation65_spill] sm:$0xff] %v3075_v25  ;;  %v3077_v37 = vpop.f32.mrb[29].mxu1 }
 0x18e   :  { %3890 = vst [vmem:[#allocation66_spill] sm:$0xff] %v3077_v37  ;;  %v3079_v40 = vpop.f32.mrb[30].mxu1 }
 0x18f   :  { %3891 = vst [vmem:[#allocation67_spill] sm:$0xff] %v3079_v40  ;;  %v3081_v2 = vpop.f32.mrb[31].mxu1 }
 0x190   :  { %3892 = vst [vmem:[#allocation68_spill] sm:$0xff] %v3081_v2 }
 0x194   :  { %v2235_v60 = vpop.eup %2234 }
 0x195   :  { %v2237_v58 = vpop.eup %2236  ;;  %v905_v36 = vadd.f32 1.0, %v2235_v60 }
 0x196   :  { %v904_v42 = vadd.f32 1.0, %v2237_v58 }
 0x197   :  { %2238 = vrcp.f32 %v905_v36  ;;  %v3907_v36 = vld [vmem:[#allocation37_spill] sm:$0xff] }
 0x198   :  { %2240 = vrcp.f32 %v904_v42 }
 0x1a1   :  { %v2239_v48 = vpop.eup %2238 }
 0x1a2   :  { %v2241_v52 = vpop.eup %2240  ;;  %v914_v23 = vmul.f32 0.0, %v2239_v48  ;;  %v3910_v48 = vld [vmem:[#allocation29_spill] sm:$0xff] }
 0x1b4   :  { %v884_v31 = vpop.f32.mrb[32].mxu1 }
 0x1b5   :  { %v893_v25 = vadd.f32 %v884_v31, %v385_v46  ;;  %v886_v56 = vpop.f32.mrb[33].mxu1  ;;  %v3086_v31 = vld [vmem:[#allocation10 + $0x8] sm:$0xff] }
 0x1b6   :  { %v894_v37 = vadd.f32 %v886_v56, %v387_v0  ;;  %v888_v40 = vpop.f32.mrb[34].mxu1  ;;  %v3908_v0 = vld [vmem:[#allocation28_spill] sm:$0xff] }
 0x1b7   :  { %v2032_v2 = vmul.f32 -1.442695, %v893_v25  ;;  %v889_v35 = vpop.f32.mrb[35].mxu1  ;;  %v3088_v25 = vld [vmem:[#allocation10] sm:$0xff]  ;;  %v3903_v40 = vld [vmem:[#allocation35_spill] sm:$0xff] }
 0x1b8   :  { %2242 = vtanh.f32 %v894_v37  ;;  %v3909_v35 = vld [vmem:[#allocation38_spill] sm:$0xff] }
 0x1b9   :  { %2244 = vpow2.f32 %v2032_v2  ;;  %v3904_v2 = vld [vmem:[#allocation26_spill] sm:$0xff] }
 0x1c2   :  { %v2243_v50 = vpop.eup %2242 }
 0x1c3   :  { %v2245_v45 = vpop.eup %2244  ;;  %v915_v60 = vmul.f32 %v2243_v50, %v2241_v52  ;;  %v3911_v52 = vld [vmem:[#allocation39_spill] sm:$0xff]  ;;  %v3912_v50 = vld [vmem:[#allocation30_spill] sm:$0xff] }
 0x1c4   :  { %v906_v54 = vadd.f32 1.0, %v2245_v45 }
 0x1c5   :  { %v3083_v58 = vadd.f32 %v915_v60, %v914_v23  ;;  %v3913_v60 = vld [vmem:[#allocation40_spill] sm:$0xff] }
 0x1c6   :  { %2246 = vrcp.f32 %v906_v54  ;;  %v3914_v54 = vld [vmem:[#allocation19_spill] sm:$0xff] }
 0x1c7   :  { %2248 = vtanh.f32 %v3083_v58 }
 0x1d0   :  { %v2247_v46 = vpop.eup %2246 }
 0x1d1   :  { %v2249_v56 = vpop.eup %2248 }
 0x1d2   :  { %v3090_v37 = vmul.f32 %v2249_v56, %v2247_v46  ;;  %v3915_v46 = vld [vmem:[#allocation20_spill] sm:$0xff]  ;;  %v136_v56 = vld [vmem:[#allocation7 + $0x20] sm:$0xff] }
 0x1d4   :  { %3893 = vst [vmem:[#allocation69_spill] sm:$0xff] %v3090_v37  ;;  %v920_v33 = vmul.f32 %v3090_v37, %v3086_v31  ;;  %v919_v42 = vmul.f32 %v3090_v37, %v3088_v25 }
 0x1d6   :  { %v922_v45 = vpack.c.bf16 %v920_v33, %v920_v33  ;;  %v921_v23 = vpack.c.bf16 %v919_v42, %v919_v42  ;;  %v138_v33 = vld [vmem:[#allocation7 + $0x30] sm:$0xff]  ;;  %v137_v42 = vld [vmem:[#allocation7 + $0x28] sm:$0xff] }
 0x1d8   :  { %955 = vmatprep.mubr.bf16.mxu0 %v922_v45  ;;  %996 = vmatprep.mubr.bf16.mxu1 %v922_v45  ;;  %v139_v45 = vld [vmem:[#allocation7 + $0x38] sm:$0xff] }
 0x1d9   :  { %956 = vmatmul.mubr.bf16.vlgmr.msra.gmra.mrb[4].mxu0 %v921_v23  ;;  %997 = vmatmul.mubr.bf16.vlgmr.msra.gmra.mrb[36].mxu1 %v921_v23  ;;  %v3916_v23 = vld [vmem:[#allocation41_spill] sm:$0xff] }
 0x1da   :  { %1038 = vmatpush1.bf16.msra.mxu0 %v2737_v4  ;;  %1079 = vmatpush1.bf16.msra.mxu1 %v2831_v47  ;;  %v3894_v4 = vld [vmem:[#allocation21_spill] sm:$0xff]  ;;  %v316_v37 = vadd.f32 %v3916_v23, %v136_v56 }
 0x1db   :  { %1039 = vmatprep.subr.bf16.mxu0 %v2741_v6  ;;  %1080 = vmatprep.subr.bf16.mxu1 %v2836_v49  ;;  %v3895_v6 = vld [vmem:[#allocation31_spill] sm:$0xff] }
 0x1dc   :  { %v3186_v23 = vld [vmem:[#allocation8 + $0x44] ss:$16 sps:$4 sm:$0xff]  }
 0x1de   :  { %1040 = vmatpush1.bf16.msra.mxu0 %v2743_v8  ;;  %1081 = vmatpush1.bf16.msra.mxu1 %v2843_v51  ;;  %v3896_v8 = vld [vmem:[#allocation22_spill] sm:$0xff] }
 0x1df   :  { %1041 = vmatprep.subr.bf16.mxu0 %v2746_v10  ;;  %1082 = vmatprep.subr.bf16.mxu1 %v2849_v53  ;;  %v3897_v10 = vld [vmem:[#allocation32_spill] sm:$0xff] }
 0x1e2   :  { %1042 = vmatpush1.bf16.msra.mxu0 %v2748_v12  ;;  %1083 = vmatpush1.bf16.msra.mxu1 %v2856_v55  ;;  %v3898_v12 = vld [vmem:[#allocation23_spill] sm:$0xff] }
 0x1e3   :  { %1043 = vmatprep.subr.bf16.mxu0 %v2752_v14  ;;  %1084 = vmatprep.subr.bf16.mxu1 %v2864_v57  ;;  %v3899_v14 = vld [vmem:[#allocation33_spill] sm:$0xff] }
 0x1e6   :  { %1044 = vmatpush1.bf16.msra.mxu0 %v2755_v16  ;;  %1085 = vmatpush1.bf16.msra.mxu1 %v2868_v59  ;;  %v3900_v16 = vld [vmem:[#allocation24_spill] sm:$0xff] }
 0x1e7   :  { %1045 = vmatprep.subr.bf16.mxu0 %v2758_v18  ;;  %1086 = vmatprep.subr.bf16.mxu1 %v2872_v61  ;;  %v3901_v18 = vld [vmem:[#allocation34_spill] sm:$0xff] }
 0x1ea   :  { %1046 = vmatpush1.bf16.msra.mxu0 %v2763_v21  ;;  %1087 = vmatpush1.bf16.msra.mxu1 %v2883_v62  ;;  %v3902_v21 = vld [vmem:[#allocation25_spill] sm:$0xff] }
 0x1eb   :  { %1047 = vmatprep.subr.bf16.mxu0 %v2766_v22  ;;  %1088 = vmatprep.subr.bf16.mxu1 %v2886_v63 }
 0x1ee   :  { %1048 = vmatpush1.bf16.msra.mxu0 %v2771_v24  ;;  %1089 = vmatpush1.bf16.msra.mxu1 %v2893_v1 }
 0x1ef   :  { %1049 = vmatprep.subr.bf16.mxu0 %v2775_v26  ;;  %1090 = vmatprep.subr.bf16.mxu1 %v2897_v3 }
 0x1f2   :  { %1050 = vmatpush1.bf16.msra.mxu0 %v2780_v29  ;;  %1091 = vmatpush1.bf16.msra.mxu1 %v2902_v5 }
 0x1f3   :  { %1051 = vmatprep.subr.bf16.mxu0 %v2783_v30  ;;  %1092 = vmatprep.subr.bf16.mxu1 %v2905_v7 }
 0x1f6   :  { %1052 = vmatpush1.bf16.msra.mxu0 %v2787_v32  ;;  %1093 = vmatpush1.bf16.msra.mxu1 %v2912_v9 }
 0x1f7   :  { %1053 = vmatprep.subr.bf16.mxu0 %v2791_v34  ;;  %1094 = vmatprep.subr.bf16.mxu1 %v2916_v11 }
 0x1fa   :  { %1054 = vmatpush1.bf16.msra.mxu0 %v2799_v38  ;;  %1095 = vmatpush1.bf16.msra.mxu1 %v2921_v13 }
 0x1fb   :  { %1055 = vmatprep.subr.bf16.mxu0 %v2802_v39  ;;  %1096 = vmatprep.subr.bf16.mxu1 %v2924_v15 }
 0x1fe   :  { %1056 = vmatpush1.bf16.msra.mxu0 %v3894_v4  ;;  %1097 = vmatpush1.bf16.msra.mxu1 %v2929_v17 }
 0x1ff   :  { %1057 = vmatprep.subr.bf16.mxu0 %v2812_v41  ;;  %1098 = vmatprep.subr.bf16.mxu1 %v2932_v19 }
 0x202   :  { %1058 = vmatpush1.bf16.msra.mxu0 %v2817_v43  ;;  %1099 = vmatpush1.bf16.msra.mxu1 %v2937_v20 }
 0x203   :  { %1059 = vmatprep.subr.bf16.mxu0 %v2820_v44  ;;  %1100 = vmatprep.subr.bf16.mxu1 %v3895_v6 }
 0x206   :  { %1060 = vmatpush1.bf16.msra.mxu0 %v3896_v8  ;;  %1101 = vmatpush1.bf16.msra.mxu1 %v3897_v10 }
 0x207   :  { %1061 = vmatprep.subr.bf16.mxu0 %v3898_v12  ;;  %1102 = vmatprep.subr.bf16.mxu1 %v3899_v14 }
 0x20a   :  { %1062 = vmatpush1.bf16.msra.mxu0 %v3900_v16  ;;  %1103 = vmatpush1.bf16.msra.mxu1 %v3901_v18 }
 0x20b   :  { %1063 = vmatprep.subr.bf16.mxu0 %v3902_v21  ;;  %1104 = vmatprep.subr.bf16.mxu1 %v3903_v40 }
 0x20e   :  { %1064 = vmatpush1.bf16.msra.mxu0 %v3904_v2  ;;  %1105 = vmatpush1.bf16.msra.mxu1 %v3905_v27 }
 0x20f   :  { %1065 = vmatprep.subr.bf16.mxu0 %v3906_v28  ;;  %1106 = vmatprep.subr.bf16.mxu1 %v3907_v36  ;;  %v3918_v36 = vld [vmem:[#allocation42_spill] sm:$0xff]  ;;  %v3919_v28 = vld [vmem:[#allocation56_spill] sm:$0xff] }
 0x212   :  { %1066 = vmatpush1.bf16.msra.mxu0 %v3908_v0  ;;  %1107 = vmatpush1.bf16.msra.mxu1 %v3909_v35  ;;  %v3917_v0 = vld [vmem:[#allocation55_spill] sm:$0xff] }
 0x213   :  { %1067 = vmatprep.subr.bf16.mxu0 %v3910_v48  ;;  %1108 = vmatprep.subr.bf16.mxu1 %v3911_v52  ;;  %v389_v35 = vadd.f32 %v3917_v0, %v138_v33  ;;  %v318_v48 = vadd.f32 %v3918_v36, %v137_v42  ;;  %v391_v52 = vadd.f32 %v3919_v28, %v139_v45  ;;  %v3178_v42 = vld [vmem:[#allocation8 + $0x24] ss:$16 sps:$4 sm:$0xff]   ;;  %v3182_v45 = vld [vmem:[#allocation8 + $0x20] ss:$16 sps:$4 sm:$0xff]  }
 0x216   :  { %1068 = vmatpush1.bf16.msra.mxu0 %v3912_v50  ;;  %1109 = vmatpush1.bf16.msra.mxu1 %v3913_v60 }
 0x217   :  { %1151 = vmatprep.subr.bf16.mxu0 %v3914_v54  ;;  %1192 = vmatprep.subr.bf16.mxu1 %v3915_v46 }
 0x2ac   :  { %v957_v27 = vpop.f32.mrb[4].mxu0  ;;  %v998_v50 = vpop.f32.mrb[36].mxu1 }
 0x2ad   :  { %v1005_v2 = vadd.f32 %v957_v27, %v316_v37  ;;  %v1007_v60 = vadd.f32 %v998_v50, %v389_v35  ;;  %v959_v40 = vpop.f32.mrb[5].mxu0  ;;  %v1000_v54 = vpop.f32.mrb[37].mxu1 }
 0x2ae   :  { %v1006_v21 = vadd.f32 %v959_v40, %v318_v48  ;;  %v1008_v46 = vadd.f32 %v1000_v54, %v391_v52  ;;  %v961_v18 = vpop.f32.mrb[6].mxu0  ;;  %v1002_v16 = vpop.f32.mrb[38].mxu1  ;;  %v3190_v54 = vld [vmem:[#allocation8 + $0x40] ss:$16 sps:$4 sm:$0xff]  }
 0x2af   :  { %v2033_v14 = vmul.f32 -1.442695, %v1005_v2  ;;  %v962_v12 = vpop.f32.mrb[7].mxu0  ;;  %v1003_v10 = vpop.f32.mrb[39].mxu1  ;;  %v2035_v0 = vmul.f32 -1.442695, %v1007_v60 }
 0x2b0   :  { %v2034_v56 = vmul.f32 -1.442695, %v1006_v21 }
 0x2b1   :  { %2250 = vpow2.f32 %v2033_v14 }
 0x2b2   :  { %2252 = vpow2.f32 %v2034_v56  ;;  %v3194_v56 = vld [vmem:[#allocation8 + $0x64] ss:$16 sps:$4 sm:$0xff]  }
 0x2b3   :  { %2254 = vtanh.f32 %v1008_v46 }
 0x2b4   :  { %2256 = vpow2.f32 %v2035_v0  ;;  %v3198_v0 = vld [vmem:[#allocation8 + $0x60] ss:$16 sps:$4 sm:$0xff]  }
 0x2bb   :  { %v2251_v36 = vpop.eup %2250 }
 0x2bc   :  { %v1018_v33 = vadd.f32 1.0, %v2251_v36  ;;  %v2253_v28 = vpop.eup %2252  ;;  %v3202_v36 = vld [vmem:[#allocation8 + $0x84] ss:$16 sps:$4 sm:$0xff]  }
 0x2bd   :  { %v1019_v37 = vadd.f32 1.0, %v2253_v28  ;;  %v2255_v27 = vpop.eup %2254  ;;  %v3935_v28 = vld [vmem:[#allocation39_spill] sm:$0xff] }
 0x2be   :  { %2258 = vrcp.f32 %v1018_v33  ;;  %v2257_v40 = vpop.eup %2256  ;;  %v3206_v33 = vld [vmem:[#allocation8 + $0x80] ss:$16 sps:$4 sm:$0xff]  }
 0x2bf   :  { %2260 = vrcp.f32 %v1019_v37  ;;  %v1020_v2 = vadd.f32 1.0, %v2257_v40  ;;  %v3936_v37 = vld [vmem:[#allocation30_spill] sm:$0xff]  ;;  %v3254_v40 = vld [vmem:[#allocation8 + $0x4] ss:$16 sps:$4 sm:$0xff]  }
 0x2c0   :  { %3938 = vst [vmem:[#allocation31_spill] sm:$0xff] %v3254_v40 }
 0x2c1   :  { %2262 = vrcp.f32 %v1020_v2  ;;  %v141_v2 = vld [vmem:[#allocation7 + $0x48] sm:$0xff] }
 0x2c8   :  { %v2259_v35 = vpop.eup %2258 }
 0x2c9   :  { %v1029_v18 = vmul.f32 %v2259_v35, %v2255_v27  ;;  %v2261_v16 = vpop.eup %2260  ;;  %v3937_v27 = vld [vmem:[#allocation40_spill] sm:$0xff] }
 0x2ca   :  { %v1028_v10 = vmul.f32 %v2261_v16, %v3083_v58  ;;  %v3174_v58 = vld [vmem:[#allocation8] ss:$16 sps:$4 sm:$0xff]   ;;  %v3939_v35 = vld [vmem:[#allocation20_spill] sm:$0xff] }
 0x2cb   :  { %v2263_v14 = vpop.eup %2262  ;;  %v142_v16 = vld [vmem:[#allocation7 + $0x50] sm:$0xff] }
 0x2cc   :  { %v3165_v12 = vadd.f32 %v1029_v18, %v1028_v10  ;;  %v140_v18 = vld [vmem:[#allocation7 + $0x40] sm:$0xff]  ;;  %v143_v10 = vld [vmem:[#allocation7 + $0x58] sm:$0xff] }
 0x2ce   :  { %2264 = vtanh.f32 %v3165_v12 }
 0x2d8   :  { %v2265_v21 = vpop.eup %2264 }
 0x2d9   :  { %v3168_v48 = vmul.f32 %v2265_v21, %v2263_v14  ;;  %v3940_v14 = vld [vmem:[#allocation43_spill] sm:$0xff] }
 0x2da   :  { %v322_v21 = vadd.f32 %v3940_v14, %v140_v18 }
 0x2db   :  { %3920 = vst [vmem:[#allocation21_spill] sm:$0xff] %v3168_v48  ;;  %v1034_v52 = vmul.f32 %v3168_v48, %v3086_v31  ;;  %v1033_v50 = vmul.f32 %v3168_v48, %v3088_v25 }
 0x2dd   :  { %v1036_v60 = vpack.c.bf16 %v1034_v52, %v1034_v52  ;;  %v1035_v46 = vpack.c.bf16 %v1033_v50, %v1033_v50  ;;  %v3941_v52 = vld [vmem:[#allocation57_spill] sm:$0xff] }
 0x2de   :  { %v395_v50 = vadd.f32 %v3941_v52, %v142_v16 }
 0x2df   :  { %1069 = vmatprep.mubr.bf16.mxu0 %v1036_v60  ;;  %1110 = vmatprep.mubr.bf16.mxu1 %v1036_v60  ;;  %v3942_v60 = vld [vmem:[#allocation44_spill] sm:$0xff] }
 0x2e0   :  { %1070 = vmatmul.mubr.bf16.vlgmr.msra.gmra.mrb[8].mxu0 %v1035_v46  ;;  %1111 = vmatmul.mubr.bf16.vlgmr.msra.gmra.mrb[40].mxu1 %v1035_v46  ;;  %v324_v46 = vadd.f32 %v3942_v60, %v141_v2 }
 0x2e1   :  { %1152 = vmatpush1.bf16.msra.mxu0 %v3174_v58  ;;  %1193 = vmatpush1.bf16.msra.mxu1 %v2831_v47 }
 0x2e2   :  { %1153 = vmatprep.subr.bf16.mxu0 %v3178_v42  ;;  %1194 = vmatprep.subr.bf16.mxu1 %v2836_v49 }
 0x2e5   :  { %1154 = vmatpush1.bf16.msra.mxu0 %v3182_v45  ;;  %1195 = vmatpush1.bf16.msra.mxu1 %v2843_v51 }
 0x2e6   :  { %1155 = vmatprep.subr.bf16.mxu0 %v3186_v23  ;;  %1196 = vmatprep.subr.bf16.mxu1 %v2849_v53 }
 0x2e9   :  { %1156 = vmatpush1.bf16.msra.mxu0 %v3190_v54  ;;  %1197 = vmatpush1.bf16.msra.mxu1 %v2856_v55 }
 0x2ea   :  { %1157 = vmatprep.subr.bf16.mxu0 %v3194_v56  ;;  %1198 = vmatprep.subr.bf16.mxu1 %v2864_v57 }
 0x2ed   :  { %1158 = vmatpush1.bf16.msra.mxu0 %v3198_v0  ;;  %1199 = vmatpush1.bf16.msra.mxu1 %v2868_v59 }
 0x2ee   :  { %1159 = vmatprep.subr.bf16.mxu0 %v3202_v36  ;;  %1200 = vmatprep.subr.bf16.mxu1 %v2872_v61 }
 0x2f1   :  { %1160 = vmatpush1.bf16.msra.mxu0 %v3206_v33  ;;  %1201 = vmatpush1.bf16.msra.mxu1 %v2883_v62 }
 0x2f2   :  { %1161 = vmatprep.subr.bf16.mxu0 %v2766_v22  ;;  %1202 = vmatprep.subr.bf16.mxu1 %v2886_v63  ;;  %v3921_v22 = vld [vmem:[#allocation32_spill] sm:$0xff] }
 0x2f5   :  { %1162 = vmatpush1.bf16.msra.mxu0 %v2771_v24  ;;  %1203 = vmatpush1.bf16.msra.mxu1 %v2893_v1  ;;  %v3922_v24 = vld [vmem:[#allocation23_spill] sm:$0xff] }
 0x2f6   :  { %1163 = vmatprep.subr.bf16.mxu0 %v2775_v26  ;;  %1204 = vmatprep.subr.bf16.mxu1 %v2897_v3  ;;  %v3923_v26 = vld [vmem:[#allocation33_spill] sm:$0xff] }
 0x2f9   :  { %1164 = vmatpush1.bf16.msra.mxu0 %v2780_v29  ;;  %1205 = vmatpush1.bf16.msra.mxu1 %v2902_v5  ;;  %v3924_v29 = vld [vmem:[#allocation24_spill] sm:$0xff] }
 0x2fa   :  { %1165 = vmatprep.subr.bf16.mxu0 %v2783_v30  ;;  %1206 = vmatprep.subr.bf16.mxu1 %v2905_v7  ;;  %v3925_v30 = vld [vmem:[#allocation34_spill] sm:$0xff] }
 0x2fd   :  { %1166 = vmatpush1.bf16.msra.mxu0 %v2787_v32  ;;  %1207 = vmatpush1.bf16.msra.mxu1 %v2912_v9  ;;  %v3926_v32 = vld [vmem:[#allocation25_spill] sm:$0xff] }
 0x2fe   :  { %1167 = vmatprep.subr.bf16.mxu0 %v2791_v34  ;;  %1208 = vmatprep.subr.bf16.mxu1 %v2916_v11  ;;  %v3927_v34 = vld [vmem:[#allocation35_spill] sm:$0xff] }
 0x301   :  { %1168 = vmatpush1.bf16.msra.mxu0 %v2799_v38  ;;  %1209 = vmatpush1.bf16.msra.mxu1 %v2921_v13  ;;  %v3928_v38 = vld [vmem:[#allocation26_spill] sm:$0xff] }
 0x302   :  { %1169 = vmatprep.subr.bf16.mxu0 %v2802_v39  ;;  %1210 = vmatprep.subr.bf16.mxu1 %v2924_v15  ;;  %v3929_v39 = vld [vmem:[#allocation36_spill] sm:$0xff] }
 0x305   :  { %1170 = vmatpush1.bf16.msra.mxu0 %v3894_v4  ;;  %1211 = vmatpush1.bf16.msra.mxu1 %v2929_v17  ;;  %v3933_v4 = vld [vmem:[#allocation38_spill] sm:$0xff] }
 0x306   :  { %1171 = vmatprep.subr.bf16.mxu0 %v2812_v41  ;;  %1212 = vmatprep.subr.bf16.mxu1 %v2932_v19  ;;  %v3930_v41 = vld [vmem:[#allocation27_spill] sm:$0xff] }
 0x309   :  { %1172 = vmatpush1.bf16.msra.mxu0 %v2817_v43  ;;  %1213 = vmatpush1.bf16.msra.mxu1 %v2937_v20  ;;  %v3931_v43 = vld [vmem:[#allocation37_spill] sm:$0xff] }
 0x30a   :  { %1173 = vmatprep.subr.bf16.mxu0 %v2820_v44  ;;  %1214 = vmatprep.subr.bf16.mxu1 %v3895_v6  ;;  %v3932_v44 = vld [vmem:[#allocation28_spill] sm:$0xff] }
 0x30d   :  { %1174 = vmatpush1.bf16.msra.mxu0 %v3896_v8  ;;  %1215 = vmatpush1.bf16.msra.mxu1 %v3921_v22  ;;  %v3934_v8 = vld [vmem:[#allocation29_spill] sm:$0xff] }
 0x30e   :  { %1175 = vmatprep.subr.bf16.mxu0 %v3922_v24  ;;  %1216 = vmatprep.subr.bf16.mxu1 %v3923_v26  ;;  %v3943_v24 = vld [vmem:[#allocation58_spill] sm:$0xff] }
 0x311   :  { %1176 = vmatpush1.bf16.msra.mxu0 %v3924_v29  ;;  %1217 = vmatpush1.bf16.msra.mxu1 %v3925_v30  ;;  %v397_v29 = vadd.f32 %v3943_v24, %v143_v10 }
 0x312   :  { %1177 = vmatprep.subr.bf16.mxu0 %v3926_v32  ;;  %1218 = vmatprep.subr.bf16.mxu1 %v3927_v34 }
 0x315   :  { %1178 = vmatpush1.bf16.msra.mxu0 %v3928_v38  ;;  %1219 = vmatpush1.bf16.msra.mxu1 %v3929_v39 }
 0x316   :  { %1179 = vmatprep.subr.bf16.mxu0 %v3930_v41  ;;  %1220 = vmatprep.subr.bf16.mxu1 %v3931_v43 }
 0x319   :  { %1180 = vmatpush1.bf16.msra.mxu0 %v3932_v44  ;;  %1221 = vmatpush1.bf16.msra.mxu1 %v3933_v4 }
 0x31a   :  { %1181 = vmatprep.subr.bf16.mxu0 %v3934_v8  ;;  %1222 = vmatprep.subr.bf16.mxu1 %v3935_v28 }
 0x31d   :  { %1182 = vmatpush1.bf16.msra.mxu0 %v3936_v37  ;;  %1223 = vmatpush1.bf16.msra.mxu1 %v3937_v27 }
 0x31e   :  { %1265 = vmatprep.subr.bf16.mxu0 %v3254_v40  ;;  %1306 = vmatprep.subr.bf16.mxu1 %v3939_v35 }
 0x3b3   :  { %v1071_v32 = vpop.f32.mrb[8].mxu0  ;;  %v1112_v38 = vpop.f32.mrb[40].mxu1 }
 0x3b4   :  { %v1119_v41 = vadd.f32 %v1071_v32, %v322_v21  ;;  %v1121_v44 = vadd.f32 %v1112_v38, %v395_v50  ;;  %v1073_v8 = vpop.f32.mrb[9].mxu0  ;;  %v1114_v37 = vpop.f32.mrb[41].mxu1 }
 0x3b5   :  { %v1120_v48 = vadd.f32 %v1073_v8, %v324_v46  ;;  %v1122_v35 = vadd.f32 %v1114_v37, %v397_v29  ;;  %v1075_v40 = vpop.f32.mrb[10].mxu0  ;;  %v1116_v27 = vpop.f32.mrb[42].mxu1  ;;  %v146_v8 = vld [vmem:[#allocation7 + $0x70] sm:$0xff]  ;;  %v145_v37 = vld [vmem:[#allocation7 + $0x68] sm:$0xff] }
 0x3b6   :  { %v2036_v28 = vmul.f32 -1.442695, %v1119_v41  ;;  %v1076_v4 = vpop.f32.mrb[11].mxu0  ;;  %v1117_v43 = vpop.f32.mrb[43].mxu1  ;;  %v2038_v16 = vmul.f32 -1.442695, %v1121_v44 }
 0x3b7   :  { %v2037_v18 = vmul.f32 -1.442695, %v1120_v48  ;;  %v144_v44 = vld [vmem:[#allocation7 + $0x60] sm:$0xff] }
 0x3b8   :  { %2266 = vpow2.f32 %v2036_v28 }
 0x3b9   :  { %2268 = vpow2.f32 %v2037_v18  ;;  %v3964_v18 = vld [vmem:[#allocation45_spill] sm:$0xff] }
 0x3ba   :  { %2270 = vtanh.f32 %v1122_v35  ;;  %v147_v35 = vld [vmem:[#allocation7 + $0x78] sm:$0xff] }
 0x3bb   :  { %2272 = vpow2.f32 %v2038_v16  ;;  %v326_v16 = vadd.f32 %v3964_v18, %v144_v44 }
 0x3c2   :  { %v2267_v2 = vpop.eup %2266 }
 0x3c3   :  { %v1132_v14 = vadd.f32 1.0, %v2267_v2  ;;  %v2269_v10 = vpop.eup %2268  ;;  %v3965_v2 = vld [vmem:[#allocation59_spill] sm:$0xff] }
 0x3c4   :  { %v1133_v21 = vadd.f32 1.0, %v2269_v10  ;;  %v2271_v52 = vpop.eup %2270  ;;  %v3966_v10 = vld [vmem:[#allocation46_spill] sm:$0xff] }
 0x3c5   :  { %2274 = vrcp.f32 %v1132_v14  ;;  %v2273_v50 = vpop.eup %2272  ;;  %v399_v14 = vadd.f32 %v3965_v2, %v146_v8 }
 0x3c6   :  { %2276 = vrcp.f32 %v1133_v21  ;;  %v1134_v46 = vadd.f32 1.0, %v2273_v50  ;;  %v328_v21 = vadd.f32 %v3966_v10, %v145_v37 }
 0x3c8   :  { %2278 = vrcp.f32 %v1134_v46 }
 0x3cf   :  { %v2275_v60 = vpop.eup %2274 }
 0x3d0   :  { %v1143_v40 = vmul.f32 %v2275_v60, %v2271_v52  ;;  %v2277_v27 = vpop.eup %2276  ;;  %v3967_v52 = vld [vmem:[#allocation60_spill] sm:$0xff] }
 0x3d1   :  { %v1142_v43 = vmul.f32 %v2277_v27, %v3165_v12  ;;  %v3370_v12 = vld [vmem:[#allocation8 + $0x1e4] ss:$16 sps:$4 sm:$0xff]   ;;  %v401_v50 = vadd.f32 %v3967_v52, %v147_v35 }
 0x3d2   :  { %v2279_v4 = vpop.eup %2278  ;;  %3958 = vst [vmem:[#allocation35_spill] sm:$0xff] %v3370_v12 }
 0x3d3   :  { %v3263_v48 = vadd.f32 %v1143_v40, %v1142_v43 }
 0x3d5   :  { %2280 = vtanh.f32 %v3263_v48 }
 0x3df   :  { %v2281_v28 = vpop.eup %2280 }
 0x3e0   :  { %v3266_v24 = vmul.f32 %v2281_v28, %v2279_v4 }
 0x3e2   :  { %3944 = vst [vmem:[#allocation22_spill] sm:$0xff] %v3266_v24  ;;  %v1148_v29 = vmul.f32 %v3266_v24, %v3086_v31  ;;  %v1147_v32 = vmul.f32 %v3266_v24, %v3088_v25  ;;  %v3505_v24 = vld [vmem:[#allocation8 + $0x1cc] ss:$16 sps:$4 sm:$0xff]  }
 0x3e4   :  { %v1150_v38 = vpack.c.bf16 %v1148_v29, %v1148_v29  ;;  %v1149_v41 = vpack.c.bf16 %v1147_v32, %v1147_v32 }
 0x3e6   :  { %1183 = vmatprep.mubr.bf16.mxu0 %v1150_v38  ;;  %1224 = vmatprep.mubr.bf16.mxu1 %v1150_v38 }
 0x3e7   :  { %1184 = vmatmul.mubr.bf16.vlgmr.msra.gmra.mrb[12].mxu0 %v1149_v41  ;;  %1225 = vmatmul.mubr.bf16.vlgmr.msra.gmra.mrb[44].mxu1 %v1149_v41 }
 0x3e8   :  { %1266 = vmatpush1.bf16.msra.mxu0 %v3174_v58  ;;  %1307 = vmatpush1.bf16.msra.mxu1 %v2831_v47  ;;  %v3290_v47 = vld [vmem:[#allocation8 + $0xa4] ss:$16 sps:$4 sm:$0xff]  }
 0x3e9   :  { %1267 = vmatprep.subr.bf16.mxu0 %v3178_v42  ;;  %1308 = vmatprep.subr.bf16.mxu1 %v2836_v49  ;;  %v3294_v49 = vld [vmem:[#allocation8 + $0xa0] ss:$16 sps:$4 sm:$0xff]  }
 0x3ec   :  { %1268 = vmatpush1.bf16.msra.mxu0 %v3182_v45  ;;  %1309 = vmatpush1.bf16.msra.mxu1 %v2843_v51  ;;  %v3298_v51 = vld [vmem:[#allocation8 + $0xc4] ss:$16 sps:$4 sm:$0xff]  }
 0x3ed   :  { %1269 = vmatprep.subr.bf16.mxu0 %v3186_v23  ;;  %1310 = vmatprep.subr.bf16.mxu1 %v2849_v53  ;;  %v3302_v53 = vld [vmem:[#allocation8 + $0xc0] ss:$16 sps:$4 sm:$0xff]  }
 0x3f0   :  { %1270 = vmatpush1.bf16.msra.mxu0 %v3190_v54  ;;  %1311 = vmatpush1.bf16.msra.mxu1 %v2856_v55  ;;  %v3306_v55 = vld [vmem:[#allocation8 + $0xe4] ss:$16 sps:$4 sm:$0xff]  }
 0x3f1   :  { %1271 = vmatprep.subr.bf16.mxu0 %v3194_v56  ;;  %1312 = vmatprep.subr.bf16.mxu1 %v2864_v57  ;;  %v3310_v57 = vld [vmem:[#allocation8 + $0xe0] ss:$16 sps:$4 sm:$0xff]  }
 0x3f4   :  { %1272 = vmatpush1.bf16.msra.mxu0 %v3198_v0  ;;  %1313 = vmatpush1.bf16.msra.mxu1 %v2868_v59  ;;  %v3314_v59 = vld [vmem:[#allocation8 + $0x104] ss:$16 sps:$4 sm:$0xff]  }
 0x3f5   :  { %1273 = vmatprep.subr.bf16.mxu0 %v3202_v36  ;;  %1314 = vmatprep.subr.bf16.mxu1 %v2872_v61  ;;  %v3318_v61 = vld [vmem:[#allocation8 + $0x100] ss:$16 sps:$4 sm:$0xff]  }
 0x3f8   :  { %1274 = vmatpush1.bf16.msra.mxu0 %v3206_v33  ;;  %1315 = vmatpush1.bf16.msra.mxu1 %v2883_v62  ;;  %v3322_v62 = vld [vmem:[#allocation8 + $0x124] ss:$16 sps:$4 sm:$0xff]  }
 0x3f9   :  { %1275 = vmatprep.subr.bf16.mxu0 %v3290_v47  ;;  %1316 = vmatprep.subr.bf16.mxu1 %v2886_v63  ;;  %v3326_v63 = vld [vmem:[#allocation8 + $0x120] ss:$16 sps:$4 sm:$0xff]  }
 0x3fa   :  { %3945 = vst [vmem:[#allocation19_spill] sm:$0xff] %v3326_v63 }
 0x3fc   :  { %1276 = vmatpush1.bf16.msra.mxu0 %v3294_v49  ;;  %1317 = vmatpush1.bf16.msra.mxu1 %v2893_v1  ;;  %v3330_v1 = vld [vmem:[#allocation8 + $0x144] ss:$16 sps:$4 sm:$0xff]  }
 0x3fd   :  { %1277 = vmatprep.subr.bf16.mxu0 %v3298_v51  ;;  %1318 = vmatprep.subr.bf16.mxu1 %v2897_v3  ;;  %3946 = vst [vmem:[#allocation41_spill] sm:$0xff] %v3330_v1  ;;  %v3334_v3 = vld [vmem:[#allocation8 + $0x140] ss:$16 sps:$4 sm:$0xff]  }
 0x3fe   :  { %3947 = vst [vmem:[#allocation55_spill] sm:$0xff] %v3334_v3 }
 0x400   :  { %1278 = vmatpush1.bf16.msra.mxu0 %v3302_v53  ;;  %1319 = vmatpush1.bf16.msra.mxu1 %v2902_v5  ;;  %v3338_v5 = vld [vmem:[#allocation8 + $0x164] ss:$16 sps:$4 sm:$0xff]  }
 0x401   :  { %1279 = vmatprep.subr.bf16.mxu0 %v3306_v55  ;;  %1320 = vmatprep.subr.bf16.mxu1 %v2905_v7  ;;  %3948 = vst [vmem:[#allocation42_spill] sm:$0xff] %v3338_v5  ;;  %v3342_v7 = vld [vmem:[#allocation8 + $0x160] ss:$16 sps:$4 sm:$0xff]  }
 0x402   :  { %3949 = vst [vmem:[#allocation56_spill] sm:$0xff] %v3342_v7 }
 0x404   :  { %1280 = vmatpush1.bf16.msra.mxu0 %v3310_v57  ;;  %1321 = vmatpush1.bf16.msra.mxu1 %v2912_v9  ;;  %v3346_v9 = vld [vmem:[#allocation8 + $0x184] ss:$16 sps:$4 sm:$0xff]  }
 0x405   :  { %1281 = vmatprep.subr.bf16.mxu0 %v3314_v59  ;;  %1322 = vmatprep.subr.bf16.mxu1 %v2916_v11  ;;  %3950 = vst [vmem:[#allocation32_spill] sm:$0xff] %v3346_v9  ;;  %v3350_v11 = vld [vmem:[#allocation8 + $0x180] ss:$16 sps:$4 sm:$0xff]  }
 0x406   :  { %3951 = vst [vmem:[#allocation23_spill] sm:$0xff] %v3350_v11 }
 0x408   :  { %1282 = vmatpush1.bf16.msra.mxu0 %v3318_v61  ;;  %1323 = vmatpush1.bf16.msra.mxu1 %v2921_v13  ;;  %v3354_v13 = vld [vmem:[#allocation8 + $0x1a4] ss:$16 sps:$4 sm:$0xff]  }
 0x409   :  { %1283 = vmatprep.subr.bf16.mxu0 %v3322_v62  ;;  %1324 = vmatprep.subr.bf16.mxu1 %v2924_v15  ;;  %3952 = vst [vmem:[#allocation33_spill] sm:$0xff] %v3354_v13  ;;  %v3358_v15 = vld [vmem:[#allocation8 + $0x1a0] ss:$16 sps:$4 sm:$0xff]  }
 0x40a   :  { %3953 = vst [vmem:[#allocation24_spill] sm:$0xff] %v3358_v15 }
 0x40c   :  { %1284 = vmatpush1.bf16.msra.mxu0 %v3326_v63  ;;  %1325 = vmatpush1.bf16.msra.mxu1 %v2929_v17  ;;  %v3362_v17 = vld [vmem:[#allocation8 + $0x1c4] ss:$16 sps:$4 sm:$0xff]  }
 0x40d   :  { %1285 = vmatprep.subr.bf16.mxu0 %v3330_v1  ;;  %1326 = vmatprep.subr.bf16.mxu1 %v2932_v19  ;;  %3954 = vst [vmem:[#allocation34_spill] sm:$0xff] %v3362_v17  ;;  %v3955_v19 = vld [vmem:[#allocation37_spill] sm:$0xff] }
 0x410   :  { %1286 = vmatpush1.bf16.msra.mxu0 %v3334_v3  ;;  %1327 = vmatpush1.bf16.msra.mxu1 %v2937_v20  ;;  %v3366_v20 = vld [vmem:[#allocation8 + $0x1c0] ss:$16 sps:$4 sm:$0xff]  }
 0x411   :  { %1287 = vmatprep.subr.bf16.mxu0 %v3338_v5  ;;  %1328 = vmatprep.subr.bf16.mxu1 %v3895_v6  ;;  %3956 = vst [vmem:[#allocation25_spill] sm:$0xff] %v3366_v20  ;;  %v3957_v6 = vld [vmem:[#allocation38_spill] sm:$0xff] }
 0x412   :  { %3978 = vst [vmem:[#allocation38_spill] sm:$0xff] %v3505_v24 }
 0x414   :  { %1288 = vmatpush1.bf16.msra.mxu0 %v3342_v7  ;;  %1329 = vmatpush1.bf16.msra.mxu1 %v3921_v22  ;;  %v3959_v22 = vld [vmem:[#allocation39_spill] sm:$0xff] }
 0x415   :  { %1289 = vmatprep.subr.bf16.mxu0 %v3346_v9  ;;  %1330 = vmatprep.subr.bf16.mxu1 %v3923_v26  ;;  %v3374_v26 = vld [vmem:[#allocation8 + $0x1e0] ss:$16 sps:$4 sm:$0xff]  }
 0x416   :  { %3960 = vst [vmem:[#allocation26_spill] sm:$0xff] %v3374_v26 }
 0x418   :  { %1290 = vmatpush1.bf16.msra.mxu0 %v3350_v11  ;;  %1331 = vmatpush1.bf16.msra.mxu1 %v3925_v30  ;;  %v3961_v30 = vld [vmem:[#allocation40_spill] sm:$0xff] }
 0x419   :  { %1291 = vmatprep.subr.bf16.mxu0 %v3354_v13  ;;  %1332 = vmatprep.subr.bf16.mxu1 %v3927_v34  ;;  %v3962_v34 = vld [vmem:[#allocation31_spill] sm:$0xff] }
 0x41c   :  { %1292 = vmatpush1.bf16.msra.mxu0 %v3358_v15  ;;  %1333 = vmatpush1.bf16.msra.mxu1 %v3929_v39  ;;  %v3379_v39 = vld [vmem:[#allocation8 + $0xc] ss:$16 sps:$4 sm:$0xff]  }
 0x41d   :  { %1293 = vmatprep.subr.bf16.mxu0 %v3362_v17  ;;  %1334 = vmatprep.subr.bf16.mxu1 %v3955_v19  ;;  %3963 = vst [vmem:[#allocation36_spill] sm:$0xff] %v3379_v39 }
 0x420   :  { %1294 = vmatpush1.bf16.msra.mxu0 %v3366_v20  ;;  %1335 = vmatpush1.bf16.msra.mxu1 %v3957_v6 }
 0x421   :  { %1295 = vmatprep.subr.bf16.mxu0 %v3370_v12  ;;  %1336 = vmatprep.subr.bf16.mxu1 %v3959_v22 }
 0x424   :  { %1296 = vmatpush1.bf16.msra.mxu0 %v3374_v26  ;;  %1337 = vmatpush1.bf16.msra.mxu1 %v3961_v30 }
 0x425   :  { %1379 = vmatprep.subr.bf16.mxu0 %v3962_v34  ;;  %1420 = vmatprep.subr.bf16.mxu1 %v3379_v39 }
 0x4ba   :  { %v1185_v60 = vpop.f32.mrb[12].mxu0  ;;  %v1226_v40 = vpop.f32.mrb[44].mxu1 }
 0x4bb   :  { %v1233_v27 = vadd.f32 %v1185_v60, %v326_v16  ;;  %v1235_v46 = vadd.f32 %v1226_v40, %v399_v14  ;;  %v1187_v43 = vpop.f32.mrb[13].mxu0  ;;  %v1228_v4 = vpop.f32.mrb[45].mxu1 }
 0x4bc   :  { %v1234_v28 = vadd.f32 %v1187_v43, %v328_v21  ;;  %v1236_v29 = vadd.f32 %v1228_v4, %v401_v50  ;;  %v1189_v32 = vpop.f32.mrb[14].mxu0  ;;  %v1230_v38 = vpop.f32.mrb[46].mxu1 }
 0x4bd   :  { %v2039_v41 = vmul.f32 -1.442695, %v1233_v27  ;;  %v1190_v19 = vpop.f32.mrb[15].mxu0  ;;  %v1231_v6 = vpop.f32.mrb[47].mxu1  ;;  %v2041_v30 = vmul.f32 -1.442695, %v1235_v46 }
 0x4be   :  { %v2040_v22 = vmul.f32 -1.442695, %v1234_v28  ;;  %v3405_v32 = vld [vmem:[#allocation8 + $0x28] ss:$16 sps:$4 sm:$0xff]   ;;  %v3409_v38 = vld [vmem:[#allocation8 + $0x4c] ss:$16 sps:$4 sm:$0xff]  }
 0x4bf   :  { %2282 = vpow2.f32 %v2039_v41  ;;  %v3413_v41 = vld [vmem:[#allocation8 + $0x48] ss:$16 sps:$4 sm:$0xff]   ;;  %v3417_v19 = vld [vmem:[#allocation8 + $0x6c] ss:$16 sps:$4 sm:$0xff]  }
 0x4c0   :  { %2284 = vpow2.f32 %v2040_v22  ;;  %v3421_v6 = vld [vmem:[#allocation8 + $0x68] ss:$16 sps:$4 sm:$0xff]   ;;  %v3425_v22 = vld [vmem:[#allocation8 + $0x8c] ss:$16 sps:$4 sm:$0xff]  }
 0x4c1   :  { %2286 = vtanh.f32 %v1236_v29  ;;  %v3401_v29 = vld [vmem:[#allocation8 + $0x2c] ss:$16 sps:$4 sm:$0xff]  }
 0x4c2   :  { %2288 = vpow2.f32 %v2041_v30  ;;  %v3429_v30 = vld [vmem:[#allocation8 + $0x88] ss:$16 sps:$4 sm:$0xff]  }
 0x4c9   :  { %v2283_v44 = vpop.eup %2282 }
 0x4ca   :  { %v1246_v8 = vadd.f32 1.0, %v2283_v44  ;;  %v2285_v37 = vpop.eup %2284  ;;  %v3433_v44 = vld [vmem:[#allocation8 + $0xac] ss:$16 sps:$4 sm:$0xff]  }
 0x4cb   :  { %v1247_v35 = vadd.f32 1.0, %v2285_v37  ;;  %v2287_v18 = vpop.eup %2286  ;;  %v3441_v37 = vld [vmem:[#allocation8 + $0xcc] ss:$16 sps:$4 sm:$0xff]  }
 0x4cc   :  { %2290 = vrcp.f32 %v1246_v8  ;;  %v2289_v16 = vpop.eup %2288  ;;  %v3437_v8 = vld [vmem:[#allocation8 + $0xa8] ss:$16 sps:$4 sm:$0xff]  }
 0x4cd   :  { %2292 = vrcp.f32 %v1247_v35  ;;  %v1248_v21 = vadd.f32 1.0, %v2289_v16  ;;  %v3445_v35 = vld [vmem:[#allocation8 + $0xc8] ss:$16 sps:$4 sm:$0xff]  }
 0x4ce   :  { %v3453_v16 = vld [vmem:[#allocation8 + $0xe8] ss:$16 sps:$4 sm:$0xff]  }
 0x4cf   :  { %2294 = vrcp.f32 %v1248_v21  ;;  %v3469_v21 = vld [vmem:[#allocation8 + $0x128] ss:$16 sps:$4 sm:$0xff]  }
 0x4d0   :  { %3969 = vst [vmem:[#allocation28_spill] sm:$0xff] %v3469_v21 }
 0x4d6   :  { %v2291_v2 = vpop.eup %2290 }
 0x4d7   :  { %v1257_v14 = vmul.f32 %v2291_v2, %v2287_v18  ;;  %v2293_v10 = vpop.eup %2292  ;;  %v3449_v18 = vld [vmem:[#allocation8 + $0xec] ss:$16 sps:$4 sm:$0xff]  }
 0x4d8   :  { %v1256_v52 = vmul.f32 %v2293_v10, %v3263_v48  ;;  %v3397_v48 = vld [vmem:[#allocation8 + $0x8] ss:$16 sps:$4 sm:$0xff]   ;;  %v3457_v2 = vld [vmem:[#allocation8 + $0x10c] ss:$16 sps:$4 sm:$0xff]  }
 0x4d9   :  { %v2295_v60 = vpop.eup %2294  ;;  %v3465_v10 = vld [vmem:[#allocation8 + $0x12c] ss:$16 sps:$4 sm:$0xff]  }
 0x4da   :  { %v3387_v50 = vadd.f32 %v1257_v14, %v1256_v52  ;;  %v3461_v14 = vld [vmem:[#allocation8 + $0x108] ss:$16 sps:$4 sm:$0xff]   ;;  %v3473_v52 = vld [vmem:[#allocation8 + $0x14c] ss:$16 sps:$4 sm:$0xff]  }
 0x4db   :  { %3970 = vst [vmem:[#allocation29_spill] sm:$0xff] %v3473_v52 }
 0x4dc   :  { %2296 = vtanh.f32 %v3387_v50 }
 0x4e6   :  { %v2297_v40 = vpop.eup %2296 }
 0x4e7   :  { %v3390_v27 = vmul.f32 %v2297_v40, %v2295_v60  ;;  %v3477_v60 = vld [vmem:[#allocation8 + $0x148] ss:$16 sps:$4 sm:$0xff]   ;;  %v3481_v40 = vld [vmem:[#allocation8 + $0x16c] ss:$16 sps:$4 sm:$0xff]  }
 0x4e8   :  { %3971 = vst [vmem:[#allocation30_spill] sm:$0xff] %v3477_v60  ;;  %3972 = vst [vmem:[#allocation20_spill] sm:$0xff] %v3481_v40 }
 0x4e9   :  { %3968 = vst [vmem:[#allocation27_spill] sm:$0xff] %v3390_v27  ;;  %v1262_v46 = vmul.f32 %v3390_v27, %v3086_v31  ;;  %v1261_v43 = vmul.f32 %v3390_v27, %v3088_v25  ;;  %v3501_v27 = vld [vmem:[#allocation8 + $0x1a8] ss:$16 sps:$4 sm:$0xff]  }
 0x4ea   :  { %3977 = vst [vmem:[#allocation37_spill] sm:$0xff] %v3501_v27 }
 0x4eb   :  { %v1264_v4 = vpack.c.bf16 %v1262_v46, %v1262_v46  ;;  %v1263_v28 = vpack.c.bf16 %v1261_v43, %v1261_v43  ;;  %v3485_v46 = vld [vmem:[#allocation8 + $0x168] ss:$16 sps:$4 sm:$0xff]   ;;  %v3489_v43 = vld [vmem:[#allocation8 + $0x18c] ss:$16 sps:$4 sm:$0xff]  }
 0x4ec   :  { %3973 = vst [vmem:[#allocation43_spill] sm:$0xff] %v3485_v46  ;;  %3974 = vst [vmem:[#allocation57_spill] sm:$0xff] %v3489_v43 }
 0x4ed   :  { %1297 = vmatprep.mubr.bf16.mxu0 %v1264_v4  ;;  %1338 = vmatprep.mubr.bf16.mxu1 %v1264_v4  ;;  %v3493_v4 = vld [vmem:[#allocation8 + $0x188] ss:$16 sps:$4 sm:$0xff]  }
 0x4ee   :  { %1298 = vmatmul.mubr.bf16.vlgmr.msra.gmra.mrb[16].mxu0 %v1263_v28  ;;  %1339 = vmatmul.mubr.bf16.vlgmr.msra.gmra.mrb[48].mxu1 %v1263_v28  ;;  %3975 = vst [vmem:[#allocation44_spill] sm:$0xff] %v3493_v4  ;;  %v3497_v28 = vld [vmem:[#allocation8 + $0x1ac] ss:$16 sps:$4 sm:$0xff]  }
 0x4ef   :  { %1380 = vmatpush1.bf16.msra.mxu0 %v3174_v58  ;;  %1421 = vmatpush1.bf16.msra.mxu1 %v3397_v48  ;;  %3976 = vst [vmem:[#allocation58_spill] sm:$0xff] %v3497_v28 }
 0x4f0   :  { %1381 = vmatprep.subr.bf16.mxu0 %v3178_v42  ;;  %1422 = vmatprep.subr.bf16.mxu1 %v3401_v29 }
 0x4f3   :  { %1382 = vmatpush1.bf16.msra.mxu0 %v3182_v45  ;;  %1423 = vmatpush1.bf16.msra.mxu1 %v3405_v32 }
 0x4f4   :  { %1383 = vmatprep.subr.bf16.mxu0 %v3186_v23  ;;  %1424 = vmatprep.subr.bf16.mxu1 %v3409_v38 }
 0x4f7   :  { %1384 = vmatpush1.bf16.msra.mxu0 %v3190_v54  ;;  %1425 = vmatpush1.bf16.msra.mxu1 %v3413_v41 }
 0x4f8   :  { %1385 = vmatprep.subr.bf16.mxu0 %v3194_v56  ;;  %1426 = vmatprep.subr.bf16.mxu1 %v3417_v19 }
 0x4fb   :  { %1386 = vmatpush1.bf16.msra.mxu0 %v3198_v0  ;;  %1427 = vmatpush1.bf16.msra.mxu1 %v3421_v6 }
 0x4fc   :  { %1387 = vmatprep.subr.bf16.mxu0 %v3202_v36  ;;  %1428 = vmatprep.subr.bf16.mxu1 %v3425_v22 }
 0x4ff   :  { %1388 = vmatpush1.bf16.msra.mxu0 %v3206_v33  ;;  %1429 = vmatpush1.bf16.msra.mxu1 %v3429_v30 }
 0x500   :  { %1389 = vmatprep.subr.bf16.mxu0 %v3290_v47  ;;  %1430 = vmatprep.subr.bf16.mxu1 %v3433_v44 }
 0x503   :  { %1390 = vmatpush1.bf16.msra.mxu0 %v3294_v49  ;;  %1431 = vmatpush1.bf16.msra.mxu1 %v3437_v8 }
 0x504   :  { %1391 = vmatprep.subr.bf16.mxu0 %v3298_v51  ;;  %1432 = vmatprep.subr.bf16.mxu1 %v3441_v37 }
 0x507   :  { %1392 = vmatpush1.bf16.msra.mxu0 %v3302_v53  ;;  %1433 = vmatpush1.bf16.msra.mxu1 %v3445_v35 }
 0x508   :  { %1393 = vmatprep.subr.bf16.mxu0 %v3306_v55  ;;  %1434 = vmatprep.subr.bf16.mxu1 %v3449_v18 }
 0x50b   :  { %1394 = vmatpush1.bf16.msra.mxu0 %v3310_v57  ;;  %1435 = vmatpush1.bf16.msra.mxu1 %v3453_v16 }
 0x50c   :  { %1395 = vmatprep.subr.bf16.mxu0 %v3314_v59  ;;  %1436 = vmatprep.subr.bf16.mxu1 %v3457_v2 }
 0x50f   :  { %1396 = vmatpush1.bf16.msra.mxu0 %v3318_v61  ;;  %1437 = vmatpush1.bf16.msra.mxu1 %v3461_v14 }
 0x510   :  { %1397 = vmatprep.subr.bf16.mxu0 %v3322_v62  ;;  %1438 = vmatprep.subr.bf16.mxu1 %v3465_v10 }
 0x513   :  { %1398 = vmatpush1.bf16.msra.mxu0 %v3326_v63  ;;  %1439 = vmatpush1.bf16.msra.mxu1 %v3469_v21 }
 0x514   :  { %1399 = vmatprep.subr.bf16.mxu0 %v3330_v1  ;;  %1440 = vmatprep.subr.bf16.mxu1 %v3473_v52 }
 0x517   :  { %1400 = vmatpush1.bf16.msra.mxu0 %v3334_v3  ;;  %1441 = vmatpush1.bf16.msra.mxu1 %v3477_v60 }
 0x518   :  { %1401 = vmatprep.subr.bf16.mxu0 %v3338_v5  ;;  %1442 = vmatprep.subr.bf16.mxu1 %v3481_v40 }
 0x51b   :  { %1402 = vmatpush1.bf16.msra.mxu0 %v3342_v7  ;;  %1443 = vmatpush1.bf16.msra.mxu1 %v3485_v46 }
 0x51c   :  { %1403 = vmatprep.subr.bf16.mxu0 %v3346_v9  ;;  %1444 = vmatprep.subr.bf16.mxu1 %v3489_v43  ;;  %v3984_v43 = vld [vmem:[#allocation48_spill] sm:$0xff]  ;;  %v3985_v9 = vld [vmem:[#allocation62_spill] sm:$0xff] }
 0x51f   :  { %1404 = vmatpush1.bf16.msra.mxu0 %v3350_v11  ;;  %1445 = vmatpush1.bf16.msra.mxu1 %v3493_v4  ;;  %v3509_v4 = vld [vmem:[#allocation8 + $0x1c8] ss:$16 sps:$4 sm:$0xff]  }
 0x520   :  { %1405 = vmatprep.subr.bf16.mxu0 %v3354_v13  ;;  %1446 = vmatprep.subr.bf16.mxu1 %v3497_v28  ;;  %3979 = vst [vmem:[#allocation39_spill] sm:$0xff] %v3509_v4  ;;  %v3513_v28 = vld [vmem:[#allocation8 + $0x1ec] ss:$16 sps:$4 sm:$0xff]   ;;  %v3983_v13 = vld [vmem:[#allocation61_spill] sm:$0xff] }
 0x521   :  { %3980 = vst [vmem:[#allocation40_spill] sm:$0xff] %v3513_v28 }
 0x523   :  { %1406 = vmatpush1.bf16.msra.mxu0 %v3358_v15  ;;  %1447 = vmatpush1.bf16.msra.mxu1 %v3501_v27  ;;  %v3517_v27 = vld [vmem:[#allocation8 + $0x1e8] ss:$16 sps:$4 sm:$0xff]   ;;  %v3982_v15 = vld [vmem:[#allocation47_spill] sm:$0xff] }
 0x524   :  { %1407 = vmatprep.subr.bf16.mxu0 %v3362_v17  ;;  %1448 = vmatprep.subr.bf16.mxu1 %v3505_v24  ;;  %3981 = vst [vmem:[#allocation45_spill] sm:$0xff] %v3517_v27  ;;  %v150_v24 = vld [vmem:[#allocation7 + $0x90] sm:$0xff]  ;;  %v149_v17 = vld [vmem:[#allocation7 + $0x88] sm:$0xff] }
 0x525   :  { %v405_v11 = vadd.f32 %v3983_v13, %v150_v24 }
 0x527   :  { %1408 = vmatpush1.bf16.msra.mxu0 %v3366_v20  ;;  %1449 = vmatpush1.bf16.msra.mxu1 %v3509_v4  ;;  %v148_v20 = vld [vmem:[#allocation7 + $0x80] sm:$0xff]  ;;  %v151_v4 = vld [vmem:[#allocation7 + $0x98] sm:$0xff] }
 0x528   :  { %1409 = vmatprep.subr.bf16.mxu0 %v3370_v12  ;;  %1450 = vmatprep.subr.bf16.mxu1 %v3513_v28  ;;  %v332_v12 = vadd.f32 %v3982_v15, %v148_v20  ;;  %v334_v28 = vadd.f32 %v3984_v43, %v149_v17  ;;  %v3991_v43 = vld [vmem:[#allocation55_spill] sm:$0xff] }
 0x52b   :  { %1410 = vmatpush1.bf16.msra.mxu0 %v3374_v26  ;;  %1451 = vmatpush1.bf16.msra.mxu1 %v3517_v27  ;;  %v407_v26 = vadd.f32 %v3985_v9, %v151_v4  ;;  %v3992_v4 = vld [vmem:[#allocation30_spill] sm:$0xff] }
 0x52c   :  { %1493 = vmatprep.subr.bf16.mxu0 %v3962_v34  ;;  %1534 = vmatprep.subr.bf16.mxu1 %v3379_v39 }
 0x5c1   :  { %v1299_v46 = vpop.f32.mrb[16].mxu0  ;;  %v1340_v7 = vpop.f32.mrb[48].mxu1 }
 0x5c2   :  { %v1347_v40 = vadd.f32 %v1299_v46, %v332_v12  ;;  %v1349_v27 = vadd.f32 %v1340_v7, %v405_v11  ;;  %v1301_v5 = vpop.f32.mrb[17].mxu0  ;;  %v1342_v34 = vpop.f32.mrb[49].mxu1  ;;  %v3990_v46 = vld [vmem:[#allocation29_spill] sm:$0xff] }
 0x5c3   :  { %v1348_v60 = vadd.f32 %v1301_v5, %v334_v28  ;;  %v1350_v39 = vadd.f32 %v1342_v34, %v407_v26  ;;  %v1303_v3 = vpop.f32.mrb[18].mxu0  ;;  %v1344_v52 = vpop.f32.mrb[50].mxu1  ;;  %v3993_v28 = vld [vmem:[#allocation42_spill] sm:$0xff] }
 0x5c4   :  { %v2042_v1 = vmul.f32 -1.442695, %v1347_v40  ;;  %v1304_v21 = vpop.f32.mrb[19].mxu0  ;;  %v1345_v63 = vpop.f32.mrb[51].mxu1  ;;  %v2044_v24 = vmul.f32 -1.442695, %v1349_v27 }
 0x5c5   :  { %v2043_v15 = vmul.f32 -1.442695, %v1348_v60 }
 0x5c6   :  { %2298 = vpow2.f32 %v2042_v1 }
 0x5c7   :  { %2300 = vpow2.f32 %v2043_v15  ;;  %v3994_v15 = vld [vmem:[#allocation20_spill] sm:$0xff] }
 0x5c8   :  { %2302 = vtanh.f32 %v1350_v39 }
 0x5c9   :  { %2304 = vpow2.f32 %v2044_v24  ;;  %v3995_v24 = vld [vmem:[#allocation56_spill] sm:$0xff] }
 0x5d0   :  { %v2299_v13 = vpop.eup %2298 }
 0x5d1   :  { %v1360_v17 = vadd.f32 1.0, %v2299_v13  ;;  %v2301_v9 = vpop.eup %2300  ;;  %v3996_v13 = vld [vmem:[#allocation43_spill] sm:$0xff] }
 0x5d2   :  { %v1361_v7 = vadd.f32 1.0, %v2301_v9  ;;  %v2303_v11 = vpop.eup %2302  ;;  %v3998_v9 = vld [vmem:[#allocation57_spill] sm:$0xff] }
 0x5d3   :  { %2306 = vrcp.f32 %v1360_v17  ;;  %v2305_v5 = vpop.eup %2304  ;;  %v3997_v17 = vld [vmem:[#allocation32_spill] sm:$0xff] }
 0x5d4   :  { %2308 = vrcp.f32 %v1361_v7  ;;  %v1362_v26 = vadd.f32 1.0, %v2305_v5  ;;  %v3999_v7 = vld [vmem:[#allocation23_spill] sm:$0xff]  ;;  %v4001_v5 = vld [vmem:[#allocation33_spill] sm:$0xff] }
 0x5d6   :  { %2310 = vrcp.f32 %v1362_v26  ;;  %v4005_v26 = vld [vmem:[#allocation34_spill] sm:$0xff] }
 0x5dd   :  { %v2307_v20 = vpop.eup %2306 }
 0x5de   :  { %v1371_v3 = vmul.f32 %v2307_v20, %v2303_v11  ;;  %v2309_v12 = vpop.eup %2308  ;;  %v4000_v11 = vld [vmem:[#allocation44_spill] sm:$0xff]  ;;  %v4002_v20 = vld [vmem:[#allocation58_spill] sm:$0xff] }
 0x5df   :  { %v1370_v63 = vmul.f32 %v2309_v12, %v3387_v50  ;;  %v3989_v50 = vld [vmem:[#allocation41_spill] sm:$0xff] }
 0x5e0   :  { %v2311_v1 = vpop.eup %2310  ;;  %v4004_v12 = vld [vmem:[#allocation37_spill] sm:$0xff] }
 0x5e1   :  { %v3527_v34 = vadd.f32 %v1371_v3, %v1370_v63  ;;  %v4003_v3 = vld [vmem:[#allocation24_spill] sm:$0xff]  ;;  %v4006_v63 = vld [vmem:[#allocation38_spill] sm:$0xff] }
 0x5e3   :  { %2312 = vtanh.f32 %v3527_v34 }
 0x5ed   :  { %v2313_v39 = vpop.eup %2312 }
 0x5ee   :  { %v3530_v27 = vmul.f32 %v2313_v39, %v2311_v1  ;;  %v4007_v1 = vld [vmem:[#allocation25_spill] sm:$0xff]  ;;  %v4008_v39 = vld [vmem:[#allocation39_spill] sm:$0xff] }
 0x5f0   :  { %3986 = vst [vmem:[#allocation59_spill] sm:$0xff] %v3530_v27  ;;  %v1376_v21 = vmul.f32 %v3530_v27, %v3086_v31  ;;  %v1375_v52 = vmul.f32 %v3530_v27, %v3088_v25  ;;  %v3987_v31 = vld [vmem:[#allocation19_spill] sm:$0xff]  ;;  %v3988_v25 = vld [vmem:[#allocation28_spill] sm:$0xff] }
 0x5f1   :  { %v4013_v27 = vld [vmem:[#allocation31_spill] sm:$0xff] }
 0x5f2   :  { %v1378_v60 = vpack.c.bf16 %v1376_v21, %v1376_v21  ;;  %v1377_v40 = vpack.c.bf16 %v1375_v52, %v1375_v52  ;;  %v4009_v21 = vld [vmem:[#allocation35_spill] sm:$0xff]  ;;  %v4010_v52 = vld [vmem:[#allocation40_spill] sm:$0xff] }
 0x5f4   :  { %1411 = vmatprep.mubr.bf16.mxu0 %v1378_v60  ;;  %1452 = vmatprep.mubr.bf16.mxu1 %v1378_v60  ;;  %v4011_v60 = vld [vmem:[#allocation26_spill] sm:$0xff] }
 0x5f5   :  { %1412 = vmatmul.mubr.bf16.vlgmr.msra.gmra.mrb[20].mxu0 %v1377_v40  ;;  %1453 = vmatmul.mubr.bf16.vlgmr.msra.gmra.mrb[52].mxu1 %v1377_v40  ;;  %v4012_v40 = vld [vmem:[#allocation45_spill] sm:$0xff] }
 0x5f6   :  { %1494 = vmatpush1.bf16.msra.mxu0 %v3174_v58  ;;  %1535 = vmatpush1.bf16.msra.mxu1 %v3397_v48 }
 0x5f7   :  { %1495 = vmatprep.subr.bf16.mxu0 %v3178_v42  ;;  %1536 = vmatprep.subr.bf16.mxu1 %v3401_v29 }
 0x5fa   :  { %1496 = vmatpush1.bf16.msra.mxu0 %v3182_v45  ;;  %1537 = vmatpush1.bf16.msra.mxu1 %v3405_v32 }
 0x5fb   :  { %1497 = vmatprep.subr.bf16.mxu0 %v3186_v23  ;;  %1538 = vmatprep.subr.bf16.mxu1 %v3409_v38 }
 0x5fe   :  { %1498 = vmatpush1.bf16.msra.mxu0 %v3190_v54  ;;  %1539 = vmatpush1.bf16.msra.mxu1 %v3413_v41 }
 0x5ff   :  { %1499 = vmatprep.subr.bf16.mxu0 %v3194_v56  ;;  %1540 = vmatprep.subr.bf16.mxu1 %v3417_v19 }
 0x602   :  { %1500 = vmatpush1.bf16.msra.mxu0 %v3198_v0  ;;  %1541 = vmatpush1.bf16.msra.mxu1 %v3421_v6 }
 0x603   :  { %1501 = vmatprep.subr.bf16.mxu0 %v3202_v36  ;;  %1542 = vmatprep.subr.bf16.mxu1 %v3425_v22 }
 0x606   :  { %1502 = vmatpush1.bf16.msra.mxu0 %v3206_v33  ;;  %1543 = vmatpush1.bf16.msra.mxu1 %v3429_v30 }
 0x607   :  { %1503 = vmatprep.subr.bf16.mxu0 %v3290_v47  ;;  %1544 = vmatprep.subr.bf16.mxu1 %v3433_v44 }
 0x60a   :  { %1504 = vmatpush1.bf16.msra.mxu0 %v3294_v49  ;;  %1545 = vmatpush1.bf16.msra.mxu1 %v3437_v8 }
 0x60b   :  { %1505 = vmatprep.subr.bf16.mxu0 %v3298_v51  ;;  %1546 = vmatprep.subr.bf16.mxu1 %v3441_v37 }
 0x60e   :  { %1506 = vmatpush1.bf16.msra.mxu0 %v3302_v53  ;;  %1547 = vmatpush1.bf16.msra.mxu1 %v3445_v35 }
 0x60f   :  { %1507 = vmatprep.subr.bf16.mxu0 %v3306_v55  ;;  %1548 = vmatprep.subr.bf16.mxu1 %v3449_v18 }
 0x612   :  { %1508 = vmatpush1.bf16.msra.mxu0 %v3310_v57  ;;  %1549 = vmatpush1.bf16.msra.mxu1 %v3453_v16 }
 0x613   :  { %1509 = vmatprep.subr.bf16.mxu0 %v3314_v59  ;;  %1550 = vmatprep.subr.bf16.mxu1 %v3457_v2 }
 0x616   :  { %1510 = vmatpush1.bf16.msra.mxu0 %v3318_v61  ;;  %1551 = vmatpush1.bf16.msra.mxu1 %v3461_v14 }
 0x617   :  { %1511 = vmatprep.subr.bf16.mxu0 %v3322_v62  ;;  %1552 = vmatprep.subr.bf16.mxu1 %v3465_v10 }
 0x61a   :  { %1512 = vmatpush1.bf16.msra.mxu0 %v3987_v31  ;;  %1553 = vmatpush1.bf16.msra.mxu1 %v3988_v25 }
 0x61b   :  { %1513 = vmatprep.subr.bf16.mxu0 %v3989_v50  ;;  %1554 = vmatprep.subr.bf16.mxu1 %v3990_v46 }
 0x61e   :  { %1514 = vmatpush1.bf16.msra.mxu0 %v3991_v43  ;;  %1555 = vmatpush1.bf16.msra.mxu1 %v3992_v4 }
 0x61f   :  { %1515 = vmatprep.subr.bf16.mxu0 %v3993_v28  ;;  %1556 = vmatprep.subr.bf16.mxu1 %v3994_v15 }
 0x622   :  { %1516 = vmatpush1.bf16.msra.mxu0 %v3995_v24  ;;  %1557 = vmatpush1.bf16.msra.mxu1 %v3996_v13 }
 0x623   :  { %1517 = vmatprep.subr.bf16.mxu0 %v3997_v17  ;;  %1558 = vmatprep.subr.bf16.mxu1 %v3998_v9  ;;  %v4018_v9 = vld [vmem:[#allocation64_spill] sm:$0xff] }
 0x626   :  { %1518 = vmatpush1.bf16.msra.mxu0 %v3999_v7  ;;  %1559 = vmatpush1.bf16.msra.mxu1 %v4000_v11  ;;  %v4016_v11 = vld [vmem:[#allocation63_spill] sm:$0xff]  ;;  %v4017_v7 = vld [vmem:[#allocation50_spill] sm:$0xff] }
 0x627   :  { %1519 = vmatprep.subr.bf16.mxu0 %v4001_v5  ;;  %1560 = vmatprep.subr.bf16.mxu1 %v4002_v20  ;;  %v153_v20 = vld [vmem:[#allocation7 + $0xa8] sm:$0xff]  ;;  %v4015_v5 = vld [vmem:[#allocation49_spill] sm:$0xff] }
 0x62a   :  { %1520 = vmatpush1.bf16.msra.mxu0 %v4003_v3  ;;  %1561 = vmatpush1.bf16.msra.mxu1 %v4004_v12  ;;  %v4014_v3 = vld [vmem:[#allocation36_spill] sm:$0xff]  ;;  %v152_v12 = vld [vmem:[#allocation7 + $0xa0] sm:$0xff] }
 0x62b   :  { %1521 = vmatprep.subr.bf16.mxu0 %v4005_v26  ;;  %1562 = vmatprep.subr.bf16.mxu1 %v4006_v63  ;;  %v154_v26 = vld [vmem:[#allocation7 + $0xb0] sm:$0xff]  ;;  %v155_v63 = vld [vmem:[#allocation7 + $0xb8] sm:$0xff] }
 0x62e   :  { %1522 = vmatpush1.bf16.msra.mxu0 %v4007_v1  ;;  %1563 = vmatpush1.bf16.msra.mxu1 %v4008_v39  ;;  %v336_v1 = vadd.f32 %v4015_v5, %v152_v12  ;;  %v409_v39 = vadd.f32 %v4016_v11, %v154_v26 }
 0x62f   :  { %1523 = vmatprep.subr.bf16.mxu0 %v4009_v21  ;;  %1564 = vmatprep.subr.bf16.mxu1 %v4010_v52  ;;  %v338_v21 = vadd.f32 %v4017_v7, %v153_v20  ;;  %v411_v52 = vadd.f32 %v4018_v9, %v155_v63 }
 0x632   :  { %1524 = vmatpush1.bf16.msra.mxu0 %v4011_v60  ;;  %1565 = vmatpush1.bf16.msra.mxu1 %v4012_v40 }
 0x633   :  { %1607 = vmatprep.subr.bf16.mxu0 %v4013_v27  ;;  %1648 = vmatprep.subr.bf16.mxu1 %v4014_v3 }
 0x6c8   :  { %v1413_v17 = vpop.f32.mrb[20].mxu0  ;;  %v1454_v60 = vpop.f32.mrb[52].mxu1 }
 0x6c9   :  { %v1461_v13 = vadd.f32 %v1413_v17, %v336_v1  ;;  %v1463_v40 = vadd.f32 %v1454_v60, %v409_v39  ;;  %v1415_v24 = vpop.f32.mrb[21].mxu0  ;;  %v1456_v27 = vpop.f32.mrb[53].mxu1  ;;  %v3610_v1 = vld [vmem:[#allocation10 + $0x8] sm:$0xff] }
 0x6ca   :  { %v1462_v15 = vadd.f32 %v1415_v24, %v338_v21  ;;  %v1464_v3 = vadd.f32 %v1456_v27, %v411_v52  ;;  %v1417_v28 = vpop.f32.mrb[22].mxu0  ;;  %v1458_v4 = vpop.f32.mrb[54].mxu1  ;;  %v3614_v21 = vld [vmem:[#allocation10] sm:$0xff] }
 0x6cb   :  { %v2045_v43 = vmul.f32 -1.442695, %v1461_v13  ;;  %v1418_v46 = vpop.f32.mrb[23].mxu0  ;;  %v1459_v50 = vpop.f32.mrb[55].mxu1  ;;  %v2047_v11 = vmul.f32 -1.442695, %v1463_v40 }
 0x6cc   :  { %v2046_v5 = vmul.f32 -1.442695, %v1462_v15 }
 0x6cd   :  { %2314 = vpow2.f32 %v2045_v43 }
 0x6ce   :  { %2316 = vpow2.f32 %v2046_v5 }
 0x6cf   :  { %2318 = vtanh.f32 %v1464_v3 }
 0x6d0   :  { %2320 = vpow2.f32 %v2047_v11 }
 0x6d7   :  { %v2315_v7 = vpop.eup %2314 }
 0x6d8   :  { %v1474_v20 = vadd.f32 1.0, %v2315_v7  ;;  %v2317_v9 = vpop.eup %2316 }
 0x6d9   :  { %v1475_v17 = vadd.f32 1.0, %v2317_v9  ;;  %v2319_v12 = vpop.eup %2318 }
 0x6da   :  { %2322 = vrcp.f32 %v1474_v20  ;;  %v2321_v24 = vpop.eup %2320 }
 0x6db   :  { %2324 = vrcp.f32 %v1475_v17  ;;  %v1476_v13 = vadd.f32 1.0, %v2321_v24 }
 0x6dd   :  { %2326 = vrcp.f32 %v1476_v13 }
 0x6e4   :  { %v2323_v26 = vpop.eup %2322 }
 0x6e5   :  { %v1485_v28 = vmul.f32 %v2323_v26, %v2319_v12  ;;  %v2325_v4 = vpop.eup %2324 }
 0x6e6   :  { %v1484_v50 = vmul.f32 %v2325_v4, %v3527_v34 }
 0x6e7   :  { %v2327_v43 = vpop.eup %2326 }
 0x6e8   :  { %v3605_v46 = vadd.f32 %v1485_v28, %v1484_v50 }
 0x6ea   :  { %2328 = vtanh.f32 %v3605_v46 }
 0x6f4   :  { %v2329_v15 = vpop.eup %2328 }
 0x6f5   :  { %v3608_v63 = vmul.f32 %v2329_v15, %v2327_v43 }
 0x6f7   :  { %v1490_v39 = vmul.f32 %v3610_v1, %v3608_v63  ;;  %v1489_v52 = vmul.f32 %v3614_v21, %v3608_v63 }
 0x6f9   :  { %v1492_v34 = vpack.c.bf16 %v1490_v39, %v1490_v39  ;;  %v1491_v60 = vpack.c.bf16 %v1489_v52, %v1489_v52 }
 0x6fb   :  { %1525 = vmatprep.mubr.bf16.mxu0 %v1492_v34  ;;  %1566 = vmatprep.mubr.bf16.mxu1 %v1492_v34 }
 0x6fc   :  { %1526 = vmatmul.mubr.bf16.vlgmr.msra.gmra.mrb[24].mxu0 %v1491_v60  ;;  %1567 = vmatmul.mubr.bf16.vlgmr.msra.gmra.mrb[56].mxu1 %v1491_v60 }
 0x6fd   :  { %1608 = vmatpush1.bf16.msra.mxu0 %v3174_v58  ;;  %1649 = vmatpush1.bf16.msra.mxu1 %v3397_v48  ;;  %v4019_v58 = vld [vmem:[#allocation41_spill] sm:$0xff] }
 0x6fe   :  { %1609 = vmatprep.subr.bf16.mxu0 %v3178_v42  ;;  %1650 = vmatprep.subr.bf16.mxu1 %v3401_v29  ;;  %v4020_v42 = vld [vmem:[#allocation29_spill] sm:$0xff]  ;;  %v4038_v29 = vld [vmem:[#allocation39_spill] sm:$0xff] }
 0x6ff   :  { %v4037_v48 = vld [vmem:[#allocation25_spill] sm:$0xff] }
 0x701   :  { %1610 = vmatpush1.bf16.msra.mxu0 %v3182_v45  ;;  %1651 = vmatpush1.bf16.msra.mxu1 %v3405_v32  ;;  %v4021_v45 = vld [vmem:[#allocation55_spill] sm:$0xff] }
 0x702   :  { %1611 = vmatprep.subr.bf16.mxu0 %v3186_v23  ;;  %1652 = vmatprep.subr.bf16.mxu1 %v3409_v38  ;;  %v4022_v23 = vld [vmem:[#allocation30_spill] sm:$0xff]  ;;  %v4039_v32 = vld [vmem:[#allocation35_spill] sm:$0xff]  ;;  %v4040_v38 = vld [vmem:[#allocation40_spill] sm:$0xff] }
 0x705   :  { %1612 = vmatpush1.bf16.msra.mxu0 %v3190_v54  ;;  %1653 = vmatpush1.bf16.msra.mxu1 %v3413_v41  ;;  %v4023_v54 = vld [vmem:[#allocation42_spill] sm:$0xff] }
 0x706   :  { %1613 = vmatprep.subr.bf16.mxu0 %v3194_v56  ;;  %1654 = vmatprep.subr.bf16.mxu1 %v3417_v19  ;;  %v4024_v56 = vld [vmem:[#allocation20_spill] sm:$0xff]  ;;  %v4041_v41 = vld [vmem:[#allocation26_spill] sm:$0xff]  ;;  %v4042_v19 = vld [vmem:[#allocation45_spill] sm:$0xff] }
 0x709   :  { %1614 = vmatpush1.bf16.msra.mxu0 %v3198_v0  ;;  %1655 = vmatpush1.bf16.msra.mxu1 %v3421_v6  ;;  %v4025_v0 = vld [vmem:[#allocation56_spill] sm:$0xff] }
 0x70a   :  { %1615 = vmatprep.subr.bf16.mxu0 %v3202_v36  ;;  %1656 = vmatprep.subr.bf16.mxu1 %v3425_v22  ;;  %v4026_v36 = vld [vmem:[#allocation43_spill] sm:$0xff]  ;;  %v156_v22 = vld [vmem:[#allocation7 + $0xc0] sm:$0xff] }
 0x70b   :  { %v2212_v6 = vld [vmem:[#allocation11 + $0x4] ss:$8 sps:$4 sm:$0xff]  }
 0x70d   :  { %1616 = vmatpush1.bf16.msra.mxu0 %v3206_v33  ;;  %1657 = vmatpush1.bf16.msra.mxu1 %v3429_v30  ;;  %v4027_v33 = vld [vmem:[#allocation32_spill] sm:$0xff]  ;;  %v158_v30 = vld [vmem:[#allocation7 + $0xd0] sm:$0xff] }
 0x70e   :  { %1617 = vmatprep.subr.bf16.mxu0 %v3290_v47  ;;  %1658 = vmatprep.subr.bf16.mxu1 %v3433_v44  ;;  %v4028_v47 = vld [vmem:[#allocation57_spill] sm:$0xff]  ;;  %v157_v44 = vld [vmem:[#allocation7 + $0xc8] sm:$0xff] }
 0x711   :  { %1618 = vmatpush1.bf16.msra.mxu0 %v3294_v49  ;;  %1659 = vmatpush1.bf16.msra.mxu1 %v3437_v8  ;;  %v4029_v49 = vld [vmem:[#allocation23_spill] sm:$0xff]  ;;  %v159_v8 = vld [vmem:[#allocation7 + $0xd8] sm:$0xff] }
 0x712   :  { %1619 = vmatprep.subr.bf16.mxu0 %v3298_v51  ;;  %1660 = vmatprep.subr.bf16.mxu1 %v3441_v37  ;;  %v4030_v51 = vld [vmem:[#allocation44_spill] sm:$0xff]  ;;  %v4043_v37 = vld [vmem:[#allocation51_spill] sm:$0xff] }
 0x715   :  { %1620 = vmatpush1.bf16.msra.mxu0 %v3302_v53  ;;  %1661 = vmatpush1.bf16.msra.mxu1 %v3445_v35  ;;  %v4031_v53 = vld [vmem:[#allocation33_spill] sm:$0xff]  ;;  %v342_v35 = vadd.f32 %v4043_v37, %v156_v22 }
 0x716   :  { %1621 = vmatprep.subr.bf16.mxu0 %v3306_v55  ;;  %1662 = vmatprep.subr.bf16.mxu1 %v3449_v18  ;;  %v4032_v55 = vld [vmem:[#allocation58_spill] sm:$0xff]  ;;  %v4044_v18 = vld [vmem:[#allocation65_spill] sm:$0xff] }
 0x717   :  { %v4049_v22 = vld [vmem:[#allocation21_spill] sm:$0xff] }
 0x719   :  { %1622 = vmatpush1.bf16.msra.mxu0 %v3310_v57  ;;  %1663 = vmatpush1.bf16.msra.mxu1 %v3453_v16  ;;  %v4033_v57 = vld [vmem:[#allocation24_spill] sm:$0xff]  ;;  %v415_v16 = vadd.f32 %v4044_v18, %v158_v30 }
 0x71a   :  { %1623 = vmatprep.subr.bf16.mxu0 %v3314_v59  ;;  %1664 = vmatprep.subr.bf16.mxu1 %v3457_v2  ;;  %v4034_v59 = vld [vmem:[#allocation37_spill] sm:$0xff]  ;;  %v4045_v2 = vld [vmem:[#allocation52_spill] sm:$0xff] }
 0x71d   :  { %1624 = vmatpush1.bf16.msra.mxu0 %v3318_v61  ;;  %1665 = vmatpush1.bf16.msra.mxu1 %v3461_v14  ;;  %v4035_v61 = vld [vmem:[#allocation34_spill] sm:$0xff]  ;;  %v344_v14 = vadd.f32 %v4045_v2, %v157_v44  ;;  %v162_v2 = vld [vmem:[#allocation7 + $0xf0] sm:$0xff] }
 0x71e   :  { %1625 = vmatprep.subr.bf16.mxu0 %v3322_v62  ;;  %1666 = vmatprep.subr.bf16.mxu1 %v3465_v10  ;;  %v4036_v62 = vld [vmem:[#allocation38_spill] sm:$0xff] }
 0x71f   :  { %v4046_v10 = vld [vmem:[#allocation66_spill] sm:$0xff] }
 0x720   :  { %v4050_v44 = vld [vmem:[#allocation22_spill] sm:$0xff] }
 0x721   :  { %1626 = vmatpush1.bf16.msra.mxu0 %v3987_v31  ;;  %1667 = vmatpush1.bf16.msra.mxu1 %v3988_v25  ;;  %v417_v31 = vadd.f32 %v4046_v10, %v159_v8  ;;  %v4051_v8 = vld [vmem:[#allocation27_spill] sm:$0xff]  ;;  %v163_v10 = vld [vmem:[#allocation7 + $0xf8] sm:$0xff] }
 0x722   :  { %1627 = vmatprep.subr.bf16.mxu0 %v4019_v58  ;;  %1668 = vmatprep.subr.bf16.mxu1 %v4020_v42  ;;  %v1718_v37 = vpack.c.bf16 %v4051_v8, %v4050_v44 }
 0x725   :  { %1628 = vmatpush1.bf16.msra.mxu0 %v4021_v45  ;;  %1669 = vmatpush1.bf16.msra.mxu1 %v4022_v23 }
 0x726   :  { %1629 = vmatprep.subr.bf16.mxu0 %v4023_v54  ;;  %1670 = vmatprep.subr.bf16.mxu1 %v4024_v56 }
 0x729   :  { %1630 = vmatpush1.bf16.msra.mxu0 %v4025_v0  ;;  %1671 = vmatpush1.bf16.msra.mxu1 %v4026_v36 }
 0x72a   :  { %1631 = vmatprep.subr.bf16.mxu0 %v4027_v33  ;;  %1672 = vmatprep.subr.bf16.mxu1 %v4028_v47 }
 0x72d   :  { %1632 = vmatpush1.bf16.msra.mxu0 %v4029_v49  ;;  %1673 = vmatpush1.bf16.msra.mxu1 %v4030_v51  ;;  %v2210_v49 = vld [vmem:[#allocation11] ss:$8 sps:$4 sm:$0xff]  }
 0x72e   :  { %1633 = vmatprep.subr.bf16.mxu0 %v4031_v53  ;;  %1674 = vmatprep.subr.bf16.mxu1 %v4032_v55  ;;  %v2215_v53 = vld [vmem:[#allocation11 + $0x14] ss:$8 sps:$4 sm:$0xff]   ;;  %v4047_v55 = vmov 0  }
 0x731   :  { %1634 = vmatpush1.bf16.msra.mxu0 %v4033_v57  ;;  %1675 = vmatpush1.bf16.msra.mxu1 %v4034_v59  ;;  %v2218_v57 = vld [vmem:[#allocation11 + $0x24] ss:$8 sps:$4 sm:$0xff]   ;;  %v2216_v59 = vld [vmem:[#allocation11 + $0x20] ss:$8 sps:$4 sm:$0xff]  }
 0x732   :  { %1635 = vmatprep.subr.bf16.mxu0 %v4035_v61  ;;  %1676 = vmatprep.subr.bf16.mxu1 %v4036_v62  ;;  %v2224_v61 = vld [vmem:[#allocation11 + $0x44] ss:$8 sps:$4 sm:$0xff]   ;;  %v2222_v62 = vld [vmem:[#allocation11 + $0x40] ss:$8 sps:$4 sm:$0xff]  }
 0x735   :  { %1636 = vmatpush1.bf16.msra.mxu0 %v4037_v48  ;;  %1677 = vmatpush1.bf16.msra.mxu1 %v4038_v29  ;;  %v2227_v48 = vld [vmem:[#allocation11 + $0x54] ss:$8 sps:$4 sm:$0xff]   ;;  %v2225_v29 = vld [vmem:[#allocation11 + $0x50] ss:$8 sps:$4 sm:$0xff]  }
 0x736   :  { %1637 = vmatprep.subr.bf16.mxu0 %v4039_v32  ;;  %1678 = vmatprep.subr.bf16.mxu1 %v4040_v38  ;;  %v2230_v32 = vld [vmem:[#allocation11 + $0x64] ss:$8 sps:$4 sm:$0xff]   ;;  %v2228_v38 = vld [vmem:[#allocation11 + $0x60] ss:$8 sps:$4 sm:$0xff]  }
 0x739   :  { %1638 = vmatpush1.bf16.msra.mxu0 %v4041_v41  ;;  %1679 = vmatpush1.bf16.msra.mxu1 %v4042_v19  ;;  %v2233_v41 = vld [vmem:[#allocation11 + $0x74] ss:$8 sps:$4 sm:$0xff]   ;;  %v2231_v19 = vld [vmem:[#allocation11 + $0x70] ss:$8 sps:$4 sm:$0xff]  }
 0x73a   :  { %1829 = vmatprep.subr.bf16.mxu0 %v2212_v6  ;;  %v4048_v6 = vld [vmem:[#allocation69_spill] sm:$0xff] }
 0x73b   :  { %v1717_v30 = vpack.c.bf16 %v4049_v22, %v4048_v6 }
 0x7cf   :  { %v1527_v25 = vpop.f32.mrb[24].mxu0  ;;  %v1568_v40 = vpop.f32.mrb[56].mxu1 }
 0x7d0   :  { %v1575_v27 = vadd.f32 %v1527_v25, %v342_v35  ;;  %v1577_v3 = vadd.f32 %v1568_v40, %v415_v16  ;;  %v1529_v5 = vpop.f32.mrb[25].mxu0  ;;  %v1570_v11 = vpop.f32.mrb[57].mxu1  ;;  %v4052_v35 = vld [vmem:[#allocation59_spill] sm:$0xff]  ;;  %v160_v16 = vld [vmem:[#allocation7 + $0xe0] sm:$0xff] }
 0x7d1   :  { %v1576_v7 = vadd.f32 %v1529_v5, %v344_v14  ;;  %v1578_v20 = vadd.f32 %v1570_v11, %v417_v31  ;;  %v1531_v9 = vpop.f32.mrb[26].mxu0  ;;  %v1572_v17 = vpop.f32.mrb[58].mxu1  ;;  %v1719_v18 = vpack.c.bf16 %v3608_v63, %v4052_v35  ;;  %v161_v14 = vld [vmem:[#allocation7 + $0xe8] sm:$0xff]  ;;  %v4053_v31 = vld [vmem:[#allocation53_spill] sm:$0xff]  ;;  %v4054_v40 = vld [vmem:[#allocation67_spill] sm:$0xff] }
 0x7d2   :  { %v2048_v12 = vmul.f32 -1.442695, %v1575_v27  ;;  %v1532_v24 = vpop.f32.mrb[27].mxu0  ;;  %v1573_v26 = vpop.f32.mrb[59].mxu1  ;;  %v2050_v4 = vmul.f32 -1.442695, %v1577_v3  ;;  %v346_v25 = vadd.f32 %v4053_v31, %v160_v16  ;;  %v419_v27 = vadd.f32 %v4054_v40, %v162_v2 }
 0x7d3   :  { %v2049_v28 = vmul.f32 -1.442695, %v1576_v7  ;;  %v4055_v3 = vld [vmem:[#allocation54_spill] sm:$0xff]  ;;  %v4056_v11 = vld [vmem:[#allocation68_spill] sm:$0xff] }
 0x7d4   :  { %2330 = vpow2.f32 %v2048_v12  ;;  %v348_v5 = vadd.f32 %v4055_v3, %v161_v14  ;;  %v421_v7 = vadd.f32 %v4056_v11, %v163_v10 }
 0x7d5   :  { %2332 = vpow2.f32 %v2049_v28 }
 0x7d6   :  { %2334 = vtanh.f32 %v1578_v20 }
 0x7d7   :  { %2336 = vpow2.f32 %v2050_v4 }
 0x7de   :  { %v2331_v13 = vpop.eup %2330 }
 0x7df   :  { %v1588_v50 = vadd.f32 1.0, %v2331_v13  ;;  %v2333_v43 = vpop.eup %2332 }
 0x7e0   :  { %v1589_v15 = vadd.f32 1.0, %v2333_v43  ;;  %v2335_v39 = vpop.eup %2334 }
 0x7e1   :  { %2338 = vrcp.f32 %v1588_v50  ;;  %v2337_v52 = vpop.eup %2336 }
 0x7e2   :  { %2340 = vrcp.f32 %v1589_v15  ;;  %v1590_v42 = vadd.f32 1.0, %v2337_v52 }
 0x7e4   :  { %2342 = vrcp.f32 %v1590_v42  ;;  %v1739_v42 = vlaneseq }
 0x7eb   :  { %v2339_v34 = vpop.eup %2338 }
 0x7ec   :  { %v1599_v60 = vmul.f32 %v2339_v34, %v2335_v39  ;;  %v2341_v58 = vpop.eup %2340 }
 0x7ed   :  { %v1598_v45 = vmul.f32 %v2341_v58, %v3605_v46  ;;  %v2213_v46 = vld [vmem:[#allocation11 + $0x10] ss:$8 sps:$4 sm:$0xff]  }
 0x7ee   :  { %v2343_v54 = vpop.eup %2342 }
 0x7ef   :  { %v3685_v23 = vadd.f32 %v1599_v60, %v1598_v45 }
 0x7f1   :  { %2344 = vtanh.f32 %v3685_v23 }
 0x7fb   :  { %v2345_v56 = vpop.eup %2344 }
 0x7fc   :  { %v3688_v0 = vmul.f32 %v2345_v56, %v2343_v54  ;;  %v1740_v54 = vshrl.u32 %v1739_v42, 7 }
 0x7fe   :  { %v1604_v36 = vmul.f32 %v3610_v1, %v3688_v0  ;;  %v1603_v33 = vmul.f32 %v3614_v21, %v3688_v0  ;;  %v2221_v1 = vld [vmem:[#allocation11 + $0x34] ss:$8 sps:$4 sm:$0xff]   ;;  %v2219_v21 = vld [vmem:[#allocation11 + $0x30] ss:$8 sps:$4 sm:$0xff]   ;;  %v1741_v56 = vsub.s32 0, %v1740_v54 }
 0x800   :  { %v1606_v47 = vpack.c.bf16 %v1604_v36, %v1604_v36  ;;  %v1605_v51 = vpack.c.bf16 %v1603_v33, %v1603_v33  ;;  %v1737_v33 = vld [vmem:[%s3734_s6] sm:$0x3]  ;;  %s2607_s6 = smov [#allocation13]  }
 0x801   :  { %s1923_s8 = sshll.u32 %s2607_s6, 4  ;;  %s1924_s8 = int_to_ptr.vmem [resolvable:$true] %s1923_s8 }
 0x802   :  { %1639 = vmatprep.mubr.bf16.mxu0 %v1606_v47  ;;  %1680 = vmatprep.mubr.bf16.mxu1 %v1606_v47  ;;  %v1745_v47 = vsub.s32 1, %v1740_v54  ;;  %s2560_s9 = scalar_lea.vmem %s1924_s8, 2048  ;;  %p2565_p7 = scmp.lt.s32.totalorder %s1924_s8, %s1924_s8 }
 0x803   :  { %1640 = vmatmul.mubr.bf16.vlgmr.msra.gmra.mrb[28].mxu0 %v1605_v51  ;;  %1681 = vmatmul.mubr.bf16.vlgmr.msra.gmra.mrb[60].mxu1 %v1605_v51  ;;  %p2561_p6 = scmp.ne.s32.totalorder %s1924_s8, %s2560_s9  ;;  %p2566_p8 = scmp.lt.s32.totalorder %s2560_s9, %s2560_s9 }
 0x804   :  { %1830 = vmatpush1.bf16.msra.mxu0 %v2210_v49  ;;  %1861 = vmatprep.mubr.bf16.mxu0 %v4047_v55 }
 0x805   :  { %1831 = vmatprep.subr.bf16.mxu0 %v2215_v53  ;;  %p2567_p9 = por %p2566_p8, %p2565_p7 }
 0x807   :  { %p2568_p10 = pnand %p2567_p9, %p2561_p6 }
 0x808   :  { %1832 = vmatpush1.bf16.msra.mxu0 %v2213_v46  ;;  %v1742_v46 = vrot.slane %v1737_v33, %v1741_v56 }
 0x809   :  { %1833 = vmatprep.subr.bf16.mxu0 %v2218_v57 }
 0x80c   :  { %1834 = vmatpush1.bf16.msra.mxu0 %v2216_v59  ;;  %v1746_v59 = vrot.slane %v1737_v33, %v1745_v47 }
 0x80d   :  { %1835 = vmatprep.subr.bf16.mxu0 %v2221_v1 }
 0x810   :  { %1836 = vmatpush1.bf16.msra.mxu0 %v2219_v21 }
 0x811   :  { %1837 = vmatprep.subr.bf16.mxu0 %v2224_v61 }
 0x814   :  { %1838 = vmatpush1.bf16.msra.mxu0 %v2222_v62 }
 0x815   :  { %1839 = vmatprep.subr.bf16.mxu0 %v2227_v48 }
 0x818   :  { %1840 = vmatpush1.bf16.msra.mxu0 %v2225_v29 }
 0x819   :  { %1841 = vmatprep.subr.bf16.mxu0 %v2230_v32 }
 0x81c   :  { %1842 = vmatpush1.bf16.msra.mxu0 %v2228_v38 }
 0x81d   :  { %1843 = vmatprep.subr.bf16.mxu0 %v2233_v41 }
 0x820   :  { %1844 = vmatpush1.bf16.msra.mxu0 %v2231_v19 }
 0x823   :  { %1862 = vmatmul.mubr.bf16.vlgmr.msra.gmra.mrb[32].mxu0 %v1717_v30 }
 0x824   :  { %1871 = vmatprep.mubr.bf16.mxu0 %v4047_v55 }
 0x82b   :  { %1872 = vmatmul.mubr.bf16.gmra.mrb[36].mxu0 %v1718_v37 }
 0x82c   :  { %1881 = vmatprep.mubr.bf16.mxu0 %v4047_v55 }
 0x833   :  { %1882 = vmatmul.mubr.bf16.gmra.mrb[40].mxu0 %v1719_v18 }
 0x834   :  { %1891 = vmatprep.mubr.bf16.mxu0 %v4047_v55 }
 0x8d6   :  { %v1641_v20 = vpop.f32.mrb[28].mxu0  ;;  %v1682_v9 = vpop.f32.mrb[60].mxu1 }
 0x8d7   :  { %v1689_v17 = vadd.f32 %v1641_v20, %v346_v25  ;;  %v1691_v12 = vadd.f32 %v1682_v9, %v419_v27  ;;  %v1643_v63 = vpop.f32.mrb[29].mxu0  ;;  %v1684_v24 = vpop.f32.mrb[61].mxu1 }
 0x8d8   :  { %v1690_v26 = vadd.f32 %v1643_v63, %v348_v5  ;;  %v1692_v28 = vadd.f32 %v1684_v24, %v421_v7  ;;  %v1645_v4 = vpop.f32.mrb[30].mxu0  ;;  %v1686_v13 = vpop.f32.mrb[62].mxu1 }
 0x8d9   :  { %v2051_v50 = vmul.f32 -1.442695, %v1689_v17  ;;  %v1646_v43 = vpop.f32.mrb[31].mxu0  ;;  %v1687_v15 = vpop.f32.mrb[63].mxu1  ;;  %v2053_v52 = vmul.f32 -1.442695, %v1691_v12 }
 0x8da   :  { %v2052_v39 = vmul.f32 -1.442695, %v1690_v26 }
 0x8db   :  { %2346 = vpow2.f32 %v2051_v50 }
 0x8dc   :  { %2348 = vpow2.f32 %v2052_v39 }
 0x8dd   :  { %2350 = vtanh.f32 %v1692_v28 }
 0x8de   :  { %2352 = vpow2.f32 %v2053_v52 }
 0x8e5   :  { %v2347_v34 = vpop.eup %2346 }
 0x8e6   :  { %v1702_v60 = vadd.f32 1.0, %v2347_v34  ;;  %v2349_v58 = vpop.eup %2348 }
 0x8e7   :  { %v1703_v45 = vadd.f32 1.0, %v2349_v58  ;;  %v2351_v36 = vpop.eup %2350 }
 0x8e8   :  { %2354 = vrcp.f32 %v1702_v60  ;;  %v2353_v49 = vpop.eup %2352 }
 0x8e9   :  { %2356 = vrcp.f32 %v1703_v45  ;;  %v1704_v57 = vadd.f32 1.0, %v2353_v49 }
 0x8eb   :  { %2358 = vrcp.f32 %v1704_v57 }
 0x8f2   :  { %v2355_v51 = vpop.eup %2354 }
 0x8f3   :  { %v1713_v53 = vmul.f32 %v2355_v51, %v2351_v36  ;;  %v2357_v55 = vpop.eup %2356 }
 0x8f4   :  { %v1712_v1 = vmul.f32 %v2357_v55, %v3685_v23 }
 0x8f5   :  { %v2359_v35 = vpop.eup %2358 }
 0x8f6   :  { %v1863_v21 = vpop.f32.mrb[32].mxu0  ;;  %v1714_v61 = vadd.f32 %v1713_v53, %v1712_v1 }
 0x8f7   :  { %v1864_v62 = vadd.f32 %v1863_v21, %v1742_v46  ;;  %v1865_v48 = vpop.f32.mrb[33].mxu0 }
 0x8f8   :  { %v1866_v29 = vadd.f32 %v1865_v48, %v1746_v59  ;;  %v1867_v32 = vpop.f32.mrb[34].mxu0  ;;  %2360 = vtanh.f32 %v1714_v61 }
 0x8f9   :  { %1902 = vst [vmem:[#allocation13] sm:$0xff] %v1864_v62  ;;  %v1868_v38 = vadd.f32 %v1867_v32, %v1742_v46  ;;  %v1869_v41 = vpop.f32.mrb[35].mxu0 }
 0x8fa   :  { %1903 = vst [vmem:[#allocation13 + $0x8] sm:$0xff] %v1866_v29  ;;  %v1870_v19 = vadd.f32 %v1869_v41, %v1746_v59 }
 0x8fb   :  { %1904 = vst [vmem:[#allocation13 + $0x10] sm:$0xff] %v1868_v38 }
 0x8fc   :  { %1905 = vst [vmem:[#allocation13 + $0x18] sm:$0xff] %v1870_v19 }
 0x8fe   :  { %v1873_v6 = vpop.f32.mrb[36].mxu0 }
 0x8ff   :  { %v1874_v22 = vadd.f32 %v1873_v6, %v1742_v46  ;;  %v1875_v30 = vpop.f32.mrb[37].mxu0 }
 0x900   :  { %v1876_v44 = vadd.f32 %v1875_v30, %v1746_v59  ;;  %v1877_v23 = vpop.f32.mrb[38].mxu0 }
 0x901   :  { %1906 = vst [vmem:[#allocation13 + $0x20] sm:$0xff] %v1874_v22  ;;  %v1878_v8 = vadd.f32 %v1877_v23, %v1742_v46  ;;  %v1879_v37 = vpop.f32.mrb[39].mxu0 }
 0x902   :  { %1907 = vst [vmem:[#allocation13 + $0x28] sm:$0xff] %v1876_v44  ;;  %v1880_v18 = vadd.f32 %v1879_v37, %v1746_v59  ;;  %v2361_v16 = vpop.eup %2360 }
 0x903   :  { %1908 = vst [vmem:[#allocation13 + $0x30] sm:$0xff] %v1878_v8  ;;  %v1716_v2 = vmul.f32 %v2361_v16, %v2359_v35 }
 0x904   :  { %1909 = vst [vmem:[#allocation13 + $0x38] sm:$0xff] %v1880_v18 }
 0x905   :  { %v1720_v10 = vpack.c.bf16 %v1716_v2, %v3688_v0 }
 0x906   :  { %v1883_v14 = vpop.f32.mrb[40].mxu0 }
 0x907   :  { %v1884_v31 = vadd.f32 %v1883_v14, %v1742_v46  ;;  %v1885_v25 = vpop.f32.mrb[41].mxu0  ;;  %1892 = vmatmul.mubr.bf16.gmra.mrb[44].mxu0 %v1720_v10 }
 0x908   :  { %v1886_v40 = vadd.f32 %v1885_v25, %v1746_v59  ;;  %v1887_v27 = vpop.f32.mrb[42].mxu0 }
 0x909   :  { %1910 = vst [vmem:[#allocation13 + $0x40] sm:$0xff] %v1884_v31  ;;  %v1888_v3 = vadd.f32 %v1887_v27, %v1742_v46  ;;  %v1889_v5 = vpop.f32.mrb[43].mxu0 }
 0x90a   :  { %1911 = vst [vmem:[#allocation13 + $0x48] sm:$0xff] %v1886_v40  ;;  %v1890_v11 = vadd.f32 %v1889_v5, %v1746_v59 }
 0x90b   :  { %1912 = vst [vmem:[#allocation13 + $0x50] sm:$0xff] %v1888_v3 }
 0x90c   :  { %1913 = vst [vmem:[#allocation13 + $0x58] sm:$0xff] %v1890_v11 }
 0x9da   :  { %v1893_v7 = vpop.f32.mrb[44].mxu0 }
 0x9db   :  { %v1894_v20 = vadd.f32 %v1893_v7, %v1742_v46  ;;  %v1895_v9 = vpop.f32.mrb[45].mxu0 }
 0x9dc   :  { %v1896_v17 = vadd.f32 %v1895_v9, %v1746_v59  ;;  %v1897_v12 = vpop.f32.mrb[46].mxu0 }
 0x9dd   :  { %1914 = vst [vmem:[#allocation13 + $0x60] sm:$0xff] %v1894_v20  ;;  %v1898_v0 = vadd.f32 %v1897_v12, %v1742_v46  ;;  %v1899_v63 = vpop.f32.mrb[47].mxu0 }
 0x9de   :  { %1915 = vst [vmem:[#allocation13 + $0x68] sm:$0xff] %v1896_v17  ;;  %v1900_v24 = vadd.f32 %v1899_v63, %v1746_v59 }
 0x9df   :  { %1916 = vst [vmem:[#allocation13 + $0x70] sm:$0xff] %v1898_v0 }
 0x9e0   :  { %1917 = vst [vmem:[#allocation13 + $0x78] sm:$0xff] %v1900_v24 }
 0x9e1   :  { %2571 = shalt.err (!%p2568_p10)
}
 0x9e2   :  { %s2572_s14 = scalar_lea.hbm %s3735_s7, 2048 }
 0x9e3   :  { %p2573_p11 = scmp.ne.s32.totalorder %s3735_s7, %s2572_s14  ;;  %p2576_p12 = scmp.lt.u32.totalorder %s2572_s14, %s3735_s7 }
 0x9e5   :  { %p2578_p13 = pnand %p2576_p12, %p2573_p11 }
 0x9e7   :  { %2581 = shalt.err (!%p2578_p13)
}
 0x9e8   :  { %1929 = dma.vmem_to_hbm [thread:$0]  %s1924_s8, 2048, %s3735_s7, [#allocation4], %s2593_s11, %s2593_s11, %s2594_s12  }
 0x9e9   :  { %2590 = dma.done.wait [#allocation4], 2048  }
 0x9ea   :  { %2591 = vsyncadd [#allocation4], 4294965248 }
 0x9eb   :  { %1933 = vsyncpa [#allocation3], 1 }
 0x9ec   :  { %1934 = vsyncpa [#allocation6], 1 }
 0x9ed   :  { %1935 = vsyncpa [#allocation9], 1 }
 0x9ee   :  { %1936 = vsyncpa [#allocation12], 1 }
 0x9ef   :  { %1937 = vsyncpa [#allocation4], 1 }

</bundles_post_ra>
